<compile_context>
chip_gen: v5e
topology: v5e:2x2
jax: 0.10.0
libtpu: 0.0.40
codegen_flags: <defaults>
</compile_context>

<pallas_src>
import jax
import jax.numpy as jnp
from jax.experimental import pallas as pl
from jax.experimental.pallas import tpu as pltpu

NEG_SLOPE = 0.2        # GATv2Conv default negative_slope
LN_EPS = 1e-5          # PyG LayerNorm eps
SOFTMAX_EPS = 1e-16    # PyG softmax denominator epsilon
NEG_INF = -1e30


# ----------------------------------------------------------------------------- fused kernel

def _gat_layer_kernel(x_ref, ef_ref, mask_ref, pool_ref,
                      wlr_ref, blr_ref, we_ref, att_ref, bias_ref, lnw_ref, lnb_ref,
                      wf_ref, bf_ref, out_ref, h_scr):
    """One GATv2 layer per grid step; node state h carried in VMEM scratch.

    x_ref:    (N, H)      node features, zero-padded to H input columns (read at step 0)
    ef_ref:   (N*N, E)    dense edge attributes, row f = t*N + s holds edge s -> t
    mask_ref: (N, N)      dense adjacency [target, source] (1.0 where edge exists)
    pool_ref: (G, N)      row-normalized graph-assignment matrix (mean pool)
    wlr_ref:  (H, 2H)     this layer's [Wl | Wr]      (streamed via index_map(l))
    blr_ref:  (1, 2H)     this layer's [bl | br]
    we_ref:   (E, H), att/bias/ln*_ref: (1, H)        per-layer params (streamed)
    wf_ref:   (H, H), bf_ref: (1, H)                  final Linear (used at last step)
    out_ref:  (G, H)      pooled graph embeddings (written at last step)
    h_scr:    (N, H)      VMEM scratch carrying node state across layers
    """
    l = pl.program_id(0)
    num_layers = pl.num_programs(0)
    n = x_ref.shape[0]
    ch = att_ref.shape[-1]

    @pl.when(l == 0)
    def _():
        h_scr[...] = x_ref[...]

    h = h_scr[...]                                                        # (N, H)

    # ---- fused node projection: [xl | xr] from one MXU GEMM -----------------
    xlr = jnp.dot(h, wlr_ref[...], preferred_element_type=jnp.float32) + blr_ref[...]
    xl = xlr[:, :ch]                                                      # source proj (N, H)
    xr = xlr[:, ch:]                                                      # target proj (N, H)

    # ---- edge projection: ONE GEMM over all N*N candidate edges -------------
    ep = jnp.dot(ef_ref[...], we_ref[...], preferred_element_type=jnp.float32)   # (N*N, H)
    # view as (target, source, H); N % 8 == 0 keeps this a no-op relayout on TPU.
    ep3 = ep.reshape(n, n, ch)

    # xl[s] broadcasts over the leading target axis; xr[t] is a per-slab constant
    # built from sublane row-broadcasts + a major-axis concat (no risky relayout).
    xr3 = jnp.concatenate(
        [jnp.broadcast_to(xr[t:t + 1, :], (1, n, ch)) for t in range(n)], axis=0)
    s3 = ep3 + xl + xr3                                                   # (N, N, H)
    s3 = jnp.where(s3 > 0, s3, NEG_SLOPE * s3)                            # leaky_relu
    logits = jnp.sum(s3 * att_ref[...], axis=-1)                          # (N, N) [tgt, src]

    # ---- masked per-target softmax (every node has a self loop) -------------
    neg = jnp.where(mask_ref[...] > 0, logits, NEG_INF)
    m = jnp.max(neg, axis=-1, keepdims=True)                              # per-target max
    p = jnp.exp(neg - m)                                                  # non-edges -> exactly 0
    den = jnp.sum(p, axis=-1, keepdims=True) + SOFTMAX_EPS                # (N, 1)

    # ---- aggregation: one (N,N)@(N,H) GEMM; exact reciprocal for denominator
    agg = jnp.dot(p, xl, preferred_element_type=jnp.float32) * pl.reciprocal(den, approx=False)
    # TODO(synk): attention dropout (p=0.1) skipped -- inference semantics.

    # ---- conv bias + PyG LayerNorm(mode='graph', batch=None) + ReLU ---------
    h2 = agg + bias_ref[...]
    inv_nc = 1.0 / float(n * ch)
    mu = jnp.sum(jnp.sum(h2, axis=-1, keepdims=True), axis=0, keepdims=True) * inv_nc
    c = h2 - mu
    var = jnp.sum(jnp.sum(c * c, axis=-1, keepdims=True), axis=0, keepdims=True) * inv_nc
    inv_std = pl.reciprocal(jnp.sqrt(var) + LN_EPS, approx=False)         # (1, 1)
    h_new = jnp.maximum(c * inv_std * lnw_ref[...] + lnb_ref[...], 0.0)
    # TODO(synk): feature dropout (p=0.1) after activation skipped -- inference semantics.
    h_scr[...] = h_new

    # ---- last layer: mean-pool FIRST (G rows), then final Linear ------------
    @pl.when(l == num_layers - 1)
    def _():
        pooled = jnp.dot(pool_ref[...], h_new, preferred_element_type=jnp.float32)     # (G, H)
        out_ref[...] = (jnp.dot(pooled, wf_ref[...], preferred_element_type=jnp.float32)
                        + bf_ref[...])


# ----------------------------------------------------------------------------- host helpers

def densify_graph(edge_index, edge_attr, num_nodes):
    """Dense [tgt, src] mask and [tgt, src, edge_dim] attrs, self loops added with
    fill_value='mean' (mean of incoming edge attrs per target), matching PyG."""
    src, dst = edge_index[0], edge_index[1]
    e_dim = edge_attr.shape[1]
    mask = jnp.zeros((num_nodes, num_nodes), jnp.float32).at[dst, src].set(1.0)
    ef = jnp.zeros((num_nodes, num_nodes, e_dim), jnp.float32).at[dst, src].set(edge_attr)
    sums = jnp.zeros((num_nodes, e_dim), jnp.float32).at[dst].add(edge_attr)
    cnts = jnp.zeros((num_nodes,), jnp.float32).at[dst].add(1.0)
    loop_attr = sums / jnp.maximum(cnts, 1.0)[:, None]
    idx = jnp.arange(num_nodes)
    mask = mask.at[idx, idx].set(1.0)
    ef = ef.at[idx, idx].set(loop_attr)
    return mask, ef


def pooling_matrix(batch_vec, num_graphs):
    onehot = (batch_vec[None, :] == jnp.arange(num_graphs)[:, None]).astype(jnp.float32)
    counts = jnp.maximum(onehot.sum(axis=1, keepdims=True), 1.0)
    return onehot / counts


def _pad_rows(w, rows):
    if w.shape[0] < rows:
        w = jnp.concatenate([w, jnp.zeros((rows - w.shape[0], w.shape[1]), w.dtype)], axis=0)
    return w


def _pad_cols(x, cols):
    if x.shape[1] < cols:
        x = jnp.concatenate([x, jnp.zeros((x.shape[0], cols - x.shape[1]), x.dtype)], axis=1)
    return x


# ----------------------------------------------------------------------------- wrapper

def ligand_graph_model(x, edge_index, edge_attr, batch_vec, num_graphs,
                       layer_params, final_params):
    n = x.shape[0]
    hidden = final_params["w"].shape[0]
    num_layers = len(layer_params)
    edge_dim = layer_params[0]["we"].shape[0]
    assert x.shape[1] <= hidden, "layer-0 input padding assumes in_channels <= hidden"
    assert n % 8 == 0, "node count padded to a multiple of 8 keeps the (N*N,H)->(N,N,H) view free"

    mask, ef = densify_graph(edge_index, edge_attr, n)
    ef_flat = ef.reshape(n * n, edge_dim)          # row f = t*n + s (target-major)
    pool = pooling_matrix(batch_vec, num_graphs)

    # Per-layer stacks, streamed one layer per grid step.  Layer-0 input dim zero-padded.
    wlr = jnp.stack([jnp.concatenate([_pad_rows(p["wl"], hidden),
                                      _pad_rows(p["wr"], hidden)], axis=1)
                     for p in layer_params])                               # (L, H, 2H)
    blr = jnp.stack([jnp.concatenate([p["bl"], p["br"]], axis=1)
                     for p in layer_params])                               # (L, 1, 2H)
    we = jnp.stack([p["we"] for p in layer_params])                        # (L, E, H)
    att = jnp.stack([p["att"] for p in layer_params])                      # (L, 1, H)
    bias = jnp.stack([p["bias"] for p in layer_params])
    lnw = jnp.stack([p["ln_w"] for p in layer_params])
    lnb = jnp.stack([p["ln_b"] for p in layer_params])

    x_pad = _pad_cols(x, hidden)

    def const2(shape):
        return pl.BlockSpec(shape, lambda l: (0, 0))

    def layer3(shape):
        return pl.BlockSpec((None,) + shape, lambda l: (l, 0, 0))

    return pl.pallas_call(
        _gat_layer_kernel,
        grid=(num_layers,),
        in_specs=[
            const2((n, hidden)),               # x (padded)
            const2((n * n, edge_dim)),         # ef_flat
            const2((n, n)),                    # mask
            const2((num_graphs, n)),           # pool
            layer3((hidden, 2 * hidden)),      # wlr  (streamed per layer)
            layer3((1, 2 * hidden)),           # blr
            layer3((edge_dim, hidden)),        # we
            layer3((1, hidden)),               # att
            layer3((1, hidden)),               # bias
            layer3((1, hidden)),               # ln_w
            layer3((1, hidden)),               # ln_b
            const2((hidden, hidden)),          # wf
            const2((1, hidden)),               # bf
        ],
        out_specs=const2((num_graphs, hidden)),
        out_shape=jax.ShapeDtypeStruct((num_graphs, hidden), jnp.float32),
        scratch_shapes=[pltpu.VMEM((n, hidden), jnp.float32)],
        compiler_params=pltpu.CompilerParams(dimension_semantics=("arbitrary",)),
    )(x_pad, ef_flat, mask, pool, wlr, blr, we, att, bias, lnw, lnb,
      final_params["w"], final_params["b"])


# ----------------------------------------------------------------------------- params

def init_params(key, in_channels, hidden, edge_dim, num_layers):
    dims = [in_channels] + [hidden] * (num_layers - 1)
    layers = []
    for l in range(num_layers):
        din = dims[l]
        key, k0, k1, k2, k3 = jax.random.split(key, 5)
        layers.append(dict(
            wl=jax.random.normal(k0, (din, hidden), jnp.float32) / jnp.sqrt(float(din)),
            bl=jnp.zeros((1, hidden), jnp.float32),
            wr=jax.random.normal(k1, (din, hidden), jnp.float32) / jnp.sqrt(float(din)),
            br=jnp.zeros((1, hidden), jnp.float32),
            we=jax.random.normal(k2, (edge_dim, hidden), jnp.float32) / jnp.sqrt(float(edge_dim)),
            att=jax.random.normal(k3, (1, hidden), jnp.float32) / jnp.sqrt(float(hidden)),
            bias=jnp.zeros((1, hidden), jnp.float32),
            ln_w=jnp.ones((1, hidden), jnp.float32),
            ln_b=jnp.zeros((1, hidden), jnp.float32),
        ))
    key, kf = jax.random.split(key)
    final = dict(
        w=jax.random.normal(kf, (hidden, hidden), jnp.float32) / jnp.sqrt(float(hidden)),
        b=jnp.zeros((1, hidden), jnp.float32),
    )
    return layers, final


# ----------------------------------------------------------------------------- pure-JAX reference

def reference_forward(x, mask, ef, pool, layer_params, final_params):
    h = x
    for p in layer_params:
        xl = h @ p["wl"] + p["bl"]
        xr = h @ p["wr"] + p["br"]
        ep = ef @ p["we"]                                                # (N, N, H)
        s = ep + xl[None, :, :] + xr[:, None, :]
        s = jnp.where(s > 0, s, NEG_SLOPE * s)
        logits = jnp.sum(s * p["att"], axis=-1)                          # (N, N)
        neg = jnp.where(mask > 0, logits, -jnp.inf)
        m = jnp.max(neg, axis=-1, keepdims=True)
        pr = jnp.where(mask > 0, jnp.exp(neg - m), 0.0)
        den = pr.sum(-1, keepdims=True) + SOFTMAX_EPS
        agg = (pr @ xl) / den
        h2 = agg + p["bias"]
        c = h2 - h2.mean()
        std = jnp.sqrt(jnp.mean(c * c))
        h = jnp.maximum(c / (std + LN_EPS) * p["ln_w"] + p["ln_b"], 0.0)
    y = h @ final_params["w"] + final_params["b"]
    return pool @ y


# ----------------------------------------------------------------------------- main

if __name__ == "__main__":
    num_nodes, in_ch, hidden, edge_dim, num_graphs, num_layers = 16, 23, 32, 6, 2, 4
    key = jax.random.PRNGKey(0)
    k_x, k_e, k_p = jax.random.split(key, 3)

    x = jax.random.normal(k_x, (num_nodes, in_ch), jnp.float32)

    # Simple deterministic graph: bidirectional chain inside each of the 2 graphs
    # (no self loops, no duplicate edges).
    nodes_per_graph = num_nodes // num_graphs
    src_list, dst_list = [], []
    for g in range(num_graphs):
        base = g * nodes_per_graph
        for i in range(nodes_per_graph - 1):
            src_list += [base + i, base + i + 1]
            dst_list += [base + i + 1, base + i]
    edge_index = jnp.array([src_list, dst_list], dtype=jnp.int32)
    edge_attr = jax.random.normal(k_e, (edge_index.shape[1], edge_dim), jnp.float32)
    batch_vec = jnp.repeat(jnp.arange(num_graphs, dtype=jnp.int32), nodes_per_graph)

    layer_params, final_params = init_params(k_p, in_ch, hidden, edge_dim, num_layers)

    out = ligand_graph_model(x, edge_index, edge_attr, batch_vec, num_graphs,
                             layer_params, final_params)
    out = jax.block_until_ready(out)
    assert out.shape == (num_graphs, hidden), out.shape
    assert bool(jnp.all(jnp.isfinite(out)))

    mask_d, ef_d = densify_graph(edge_index, edge_attr, num_nodes)
    pool_d = pooling_matrix(batch_vec, num_graphs)
    ref = reference_forward(x, mask_d, ef_d, pool_d, layer_params, final_params)
    assert bool(jnp.allclose(out, ref, atol=1e-3, rtol=1e-3)), (out, ref)

    print("KERNEL_OK")
</pallas_src>

<mosaic_0001>
module attributes {stable_mosaic.version = 11 : i64} {
  func.func @_gat_layer_kernel(%arg0: i32, %arg1: memref<16x32xf32, #tpu.memory_space<vmem>>, %arg2: memref<256x6xf32, #tpu.memory_space<vmem>>, %arg3: memref<16x16xf32, #tpu.memory_space<vmem>>, %arg4: memref<2x16xf32, #tpu.memory_space<vmem>>, %arg5: memref<1x32x64xf32, #tpu.memory_space<vmem>>, %arg6: memref<1x1x64xf32, #tpu.memory_space<vmem>>, %arg7: memref<1x6x32xf32, #tpu.memory_space<vmem>>, %arg8: memref<1x1x32xf32, #tpu.memory_space<vmem>>, %arg9: memref<1x1x32xf32, #tpu.memory_space<vmem>>, %arg10: memref<1x1x32xf32, #tpu.memory_space<vmem>>, %arg11: memref<1x1x32xf32, #tpu.memory_space<vmem>>, %arg12: memref<32x32xf32, #tpu.memory_space<vmem>>, %arg13: memref<1x32xf32, #tpu.memory_space<vmem>>, %arg14: memref<2x32xf32, #tpu.memory_space<vmem>>, %arg15: memref<16x32xf32, #tpu.memory_space<vmem>>) attributes {dimension_semantics = [#tpu.dimension_semantics<arbitrary>], iteration_bounds = array<i64: 4>, scalar_prefetch = 0 : i64, scratch_operands = 1 : i64, tpu.core_type = #tpu.core_type<tc>, window_params = [{pipeline_mode = #tpu.pipeline_mode<synchronous>, transform_indices = @transform_0, window_bounds = array<i64: 16, 32>}, {pipeline_mode = #tpu.pipeline_mode<synchronous>, transform_indices = @transform_1, window_bounds = array<i64: 256, 6>}, {pipeline_mode = #tpu.pipeline_mode<synchronous>, transform_indices = @transform_2, window_bounds = array<i64: 16, 16>}, {pipeline_mode = #tpu.pipeline_mode<synchronous>, transform_indices = @transform_3, window_bounds = array<i64: 2, 16>}, {transform_indices = @transform_4, window_bounds = array<i64: 1, 32, 64>}, {transform_indices = @transform_5, window_bounds = array<i64: 1, 1, 64>}, {transform_indices = @transform_6, window_bounds = array<i64: 1, 6, 32>}, {transform_indices = @transform_7, window_bounds = array<i64: 1, 1, 32>}, {transform_indices = @transform_8, window_bounds = array<i64: 1, 1, 32>}, {transform_indices = @transform_9, window_bounds = array<i64: 1, 1, 32>}, {transform_indices = @transform_10, window_bounds = array<i64: 1, 1, 32>}, {pipeline_mode = #tpu.pipeline_mode<synchronous>, transform_indices = @transform_11, window_bounds = array<i64: 32, 32>}, {pipeline_mode = #tpu.pipeline_mode<synchronous>, transform_indices = @transform_12, window_bounds = array<i64: 1, 32>}, {pipeline_mode = #tpu.pipeline_mode<synchronous>, transform_indices = @transform_13, window_bounds = array<i64: 2, 32>}]} {
    %c0_i32 = arith.constant 0 : i32
    %0 = arith.cmpi eq, %arg0, %c0_i32 : i32
    %1 = arith.extui %0 : i1 to i32
    %c0_i32_0 = arith.constant 0 : i32
    %2 = arith.cmpi ne, %1, %c0_i32_0 : i32
    scf.if %2 {
      %c0_48 = arith.constant 0 : index
      %c0_49 = arith.constant 0 : index
      %139 = vector.load %arg1[%c0_48, %c0_49] : memref<16x32xf32, #tpu.memory_space<vmem>>, vector<16x32xf32>
      %c0_50 = arith.constant 0 : index
      %c0_51 = arith.constant 0 : index
      %140 = vector.load %arg15[%c0_50, %c0_51] : memref<16x32xf32, #tpu.memory_space<vmem>>, vector<16x32xf32>
      tpu.vector_store %arg15[%c0_50, %c0_51], %139 {strides = array<i32>} : memref<16x32xf32, #tpu.memory_space<vmem>>, vector<16x32xf32>,
    } else {
    }
    %c0 = arith.constant 0 : index
    %c0_1 = arith.constant 0 : index
    %3 = vector.load %arg15[%c0, %c0_1] : memref<16x32xf32, #tpu.memory_space<vmem>>, vector<16x32xf32>
    %c0_2 = arith.constant 0 : index
    %c0_3 = arith.constant 0 : index
    %c0_4 = arith.constant 0 : index
    %4 = vector.load %arg5[%c0_2, %c0_3, %c0_4] : memref<1x32x64xf32, #tpu.memory_space<vmem>>, vector<1x32x64xf32>
    %5 = vector.shape_cast %4 : vector<1x32x64xf32> to vector<32x64xf32>
    %cst = arith.constant dense<0.000000e+00> : vector<16x64xf32>
    %6 = tpu.matmul %3, %5, %cst {dimension_numbers = #tpu.dot_dimension_numbers<[1], [0], [0], [1], [0, 0, 1, 1], [], []>} : vector<16x32xf32>, vector<32x64xf32>, vector<16x64xf32> -> vector<16x64xf32>
    %c0_5 = arith.constant 0 : index
    %c0_6 = arith.constant 0 : index
    %c0_7 = arith.constant 0 : index
    %7 = vector.load %arg6[%c0_5, %c0_6, %c0_7] : memref<1x1x64xf32, #tpu.memory_space<vmem>>, vector<1x1x64xf32>
    %8 = vector.shape_cast %7 : vector<1x1x64xf32> to vector<1x64xf32>
    %9 = vector.broadcast %8 : vector<1x64xf32> to vector<16x64xf32>
    %10 = arith.addf %6, %9 : vector<16x64xf32>
    %11 = vector.extract_strided_slice %10 {offsets = [0, 0], sizes = [16, 32], strides = [1, 1]} : vector<16x64xf32> to vector<16x32xf32>
    %12 = vector.extract_strided_slice %10 {offsets = [0, 32], sizes = [16, 32], strides = [1, 1]} : vector<16x64xf32> to vector<16x32xf32>
    %c0_8 = arith.constant 0 : index
    %c0_9 = arith.constant 0 : index
    %13 = vector.load %arg2[%c0_8, %c0_9] : memref<256x6xf32, #tpu.memory_space<vmem>>, vector<256x6xf32>
    %c0_10 = arith.constant 0 : index
    %c0_11 = arith.constant 0 : index
    %c0_12 = arith.constant 0 : index
    %14 = vector.load %arg7[%c0_10, %c0_11, %c0_12] : memref<1x6x32xf32, #tpu.memory_space<vmem>>, vector<1x6x32xf32>
    %15 = vector.shape_cast %14 : vector<1x6x32xf32> to vector<6x32xf32>
    %cst_13 = arith.constant dense<0.000000e+00> : vector<256x32xf32>
    %16 = tpu.matmul %13, %15, %cst_13 {dimension_numbers = #tpu.dot_dimension_numbers<[1], [0], [0], [1], [0, 0, 1, 1], [], []>} : vector<256x6xf32>, vector<6x32xf32>, vector<256x32xf32> -> vector<256x32xf32>
    %17 = vector.shape_cast %16 : vector<256x32xf32> to vector<16x16x32xf32>
    %18 = vector.extract_strided_slice %12 {offsets = [0, 0], sizes = [1, 32], strides = [1, 1]} : vector<16x32xf32> to vector<1x32xf32>
    %19 = vector.shape_cast %18 : vector<1x32xf32> to vector<1x1x32xf32>
    %20 = vector.broadcast %19 : vector<1x1x32xf32> to vector<1x16x32xf32>
    %21 = vector.extract_strided_slice %12 {offsets = [1, 0], sizes = [1, 32], strides = [1, 1]} : vector<16x32xf32> to vector<1x32xf32>
    %22 = vector.shape_cast %21 : vector<1x32xf32> to vector<1x1x32xf32>
    %23 = vector.broadcast %22 : vector<1x1x32xf32> to vector<1x16x32xf32>
    %24 = vector.extract_strided_slice %12 {offsets = [2, 0], sizes = [1, 32], strides = [1, 1]} : vector<16x32xf32> to vector<1x32xf32>
    %25 = vector.shape_cast %24 : vector<1x32xf32> to vector<1x1x32xf32>
    %26 = vector.broadcast %25 : vector<1x1x32xf32> to vector<1x16x32xf32>
    %27 = vector.extract_strided_slice %12 {offsets = [3, 0], sizes = [1, 32], strides = [1, 1]} : vector<16x32xf32> to vector<1x32xf32>
    %28 = vector.shape_cast %27 : vector<1x32xf32> to vector<1x1x32xf32>
    %29 = vector.broadcast %28 : vector<1x1x32xf32> to vector<1x16x32xf32>
    %30 = vector.extract_strided_slice %12 {offsets = [4, 0], sizes = [1, 32], strides = [1, 1]} : vector<16x32xf32> to vector<1x32xf32>
    %31 = vector.shape_cast %30 : vector<1x32xf32> to vector<1x1x32xf32>
    %32 = vector.broadcast %31 : vector<1x1x32xf32> to vector<1x16x32xf32>
    %33 = vector.extract_strided_slice %12 {offsets = [5, 0], sizes = [1, 32], strides = [1, 1]} : vector<16x32xf32> to vector<1x32xf32>
    %34 = vector.shape_cast %33 : vector<1x32xf32> to vector<1x1x32xf32>
    %35 = vector.broadcast %34 : vector<1x1x32xf32> to vector<1x16x32xf32>
    %36 = vector.extract_strided_slice %12 {offsets = [6, 0], sizes = [1, 32], strides = [1, 1]} : vector<16x32xf32> to vector<1x32xf32>
    %37 = vector.shape_cast %36 : vector<1x32xf32> to vector<1x1x32xf32>
    %38 = vector.broadcast %37 : vector<1x1x32xf32> to vector<1x16x32xf32>
    %39 = vector.extract_strided_slice %12 {offsets = [7, 0], sizes = [1, 32], strides = [1, 1]} : vector<16x32xf32> to vector<1x32xf32>
    %40 = vector.shape_cast %39 : vector<1x32xf32> to vector<1x1x32xf32>
    %41 = vector.broadcast %40 : vector<1x1x32xf32> to vector<1x16x32xf32>
    %42 = vector.extract_strided_slice %12 {offsets = [8, 0], sizes = [1, 32], strides = [1, 1]} : vector<16x32xf32> to vector<1x32xf32>
    %43 = vector.shape_cast %42 : vector<1x32xf32> to vector<1x1x32xf32>
    %44 = vector.broadcast %43 : vector<1x1x32xf32> to vector<1x16x32xf32>
    %45 = vector.extract_strided_slice %12 {offsets = [9, 0], sizes = [1, 32], strides = [1, 1]} : vector<16x32xf32> to vector<1x32xf32>
    %46 = vector.shape_cast %45 : vector<1x32xf32> to vector<1x1x32xf32>
    %47 = vector.broadcast %46 : vector<1x1x32xf32> to vector<1x16x32xf32>
    %48 = vector.extract_strided_slice %12 {offsets = [10, 0], sizes = [1, 32], strides = [1, 1]} : vector<16x32xf32> to vector<1x32xf32>
    %49 = vector.shape_cast %48 : vector<1x32xf32> to vector<1x1x32xf32>
    %50 = vector.broadcast %49 : vector<1x1x32xf32> to vector<1x16x32xf32>
    %51 = vector.extract_strided_slice %12 {offsets = [11, 0], sizes = [1, 32], strides = [1, 1]} : vector<16x32xf32> to vector<1x32xf32>
    %52 = vector.shape_cast %51 : vector<1x32xf32> to vector<1x1x32xf32>
    %53 = vector.broadcast %52 : vector<1x1x32xf32> to vector<1x16x32xf32>
    %54 = vector.extract_strided_slice %12 {offsets = [12, 0], sizes = [1, 32], strides = [1, 1]} : vector<16x32xf32> to vector<1x32xf32>
    %55 = vector.shape_cast %54 : vector<1x32xf32> to vector<1x1x32xf32>
    %56 = vector.broadcast %55 : vector<1x1x32xf32> to vector<1x16x32xf32>
    %57 = vector.extract_strided_slice %12 {offsets = [13, 0], sizes = [1, 32], strides = [1, 1]} : vector<16x32xf32> to vector<1x32xf32>
    %58 = vector.shape_cast %57 : vector<1x32xf32> to vector<1x1x32xf32>
    %59 = vector.broadcast %58 : vector<1x1x32xf32> to vector<1x16x32xf32>
    %60 = vector.extract_strided_slice %12 {offsets = [14, 0], sizes = [1, 32], strides = [1, 1]} : vector<16x32xf32> to vector<1x32xf32>
    %61 = vector.shape_cast %60 : vector<1x32xf32> to vector<1x1x32xf32>
    %62 = vector.broadcast %61 : vector<1x1x32xf32> to vector<1x16x32xf32>
    %63 = vector.extract_strided_slice %12 {offsets = [15, 0], sizes = [1, 32], strides = [1, 1]} : vector<16x32xf32> to vector<1x32xf32>
    %64 = vector.shape_cast %63 : vector<1x32xf32> to vector<1x1x32xf32>
    %65 = vector.broadcast %64 : vector<1x1x32xf32> to vector<1x16x32xf32>
    %66 = tpu.concatenate %20, %23, %26, %29, %32, %35, %38, %41, %44, %47, %50, %53, %56, %59, %62, %65 in 0 : vector<1x16x32xf32>, vector<1x16x32xf32>, vector<1x16x32xf32>, vector<1x16x32xf32>, vector<1x16x32xf32>, vector<1x16x32xf32>, vector<1x16x32xf32>, vector<1x16x32xf32>, vector<1x16x32xf32>, vector<1x16x32xf32>, vector<1x16x32xf32>, vector<1x16x32xf32>, vector<1x16x32xf32>, vector<1x16x32xf32>, vector<1x16x32xf32>, vector<1x16x32xf32> -> vector<16x16x32xf32>
    %67 = vector.shape_cast %11 : vector<16x32xf32> to vector<1x16x32xf32>
    %68 = vector.broadcast %67 : vector<1x16x32xf32> to vector<16x16x32xf32>
    %69 = arith.addf %17, %68 : vector<16x16x32xf32>
    %70 = arith.addf %69, %66 : vector<16x16x32xf32>
    %cst_14 = arith.constant 0.000000e+00 : f32
    %71 = vector.broadcast %cst_14 : f32 to vector<16x16x32xf32>
    %72 = arith.cmpf ogt, %70, %71 : vector<16x16x32xf32>
    %cst_15 = arith.constant 2.000000e-01 : f32
    %73 = vector.broadcast %cst_15 : f32 to vector<16x16x32xf32>
    %74 = arith.mulf %73, %70 : vector<16x16x32xf32>
    %75 = arith.select %72, %70, %74 : vector<16x16x32xi1>, vector<16x16x32xf32>
    %c0_16 = arith.constant 0 : index
    %c0_17 = arith.constant 0 : index
    %c0_18 = arith.constant 0 : index
    %76 = vector.load %arg8[%c0_16, %c0_17, %c0_18] : memref<1x1x32xf32, #tpu.memory_space<vmem>>, vector<1x1x32xf32>
    %77 = vector.shape_cast %76 : vector<1x1x32xf32> to vector<1x32xf32>
    %78 = vector.shape_cast %77 : vector<1x32xf32> to vector<1x1x32xf32>
    %79 = vector.broadcast %78 : vector<1x1x32xf32> to vector<16x16x32xf32>
    %80 = arith.mulf %75, %79 : vector<16x16x32xf32>
    %cst_19 = arith.constant dense<0.000000e+00> : vector<16x16xf32>
    %81 = vector.multi_reduction <add>, %80, %cst_19 [2] : vector<16x16x32xf32> to vector<16x16xf32>
    %c0_20 = arith.constant 0 : index
    %c0_21 = arith.constant 0 : index
    %82 = vector.load %arg3[%c0_20, %c0_21] : memref<16x16xf32, #tpu.memory_space<vmem>>, vector<16x16xf32>
    %cst_22 = arith.constant 0.000000e+00 : f32
    %83 = vector.broadcast %cst_22 : f32 to vector<16x16xf32>
    %84 = arith.cmpf ogt, %82, %83 : vector<16x16xf32>
    %cst_23 = arith.constant -1.000000e+30 : f32
    %85 = vector.broadcast %cst_23 : f32 to vector<16x16xf32>
    %86 = arith.select %84, %81, %85 : vector<16x16xi1>, vector<16x16xf32>
    %cst_24 = arith.constant dense<0xFF800000> : vector<16xf32>
    %87 = vector.multi_reduction <maximumf>, %86, %cst_24 [1] : vector<16x16xf32> to vector<16xf32>
    %88 = vector.shape_cast %87 : vector<16xf32> to vector<16x1xf32>
    %89 = vector.broadcast %88 : vector<16x1xf32> to vector<16x16xf32>
    %90 = arith.subf %86, %89 : vector<16x16xf32>
    %91 = math.exp %90 : vector<16x16xf32>
    %cst_25 = arith.constant dense<0.000000e+00> : vector<16xf32>
    %92 = vector.multi_reduction <add>, %91, %cst_25 [1] : vector<16x16xf32> to vector<16xf32>
    %93 = vector.shape_cast %92 : vector<16xf32> to vector<16x1xf32>
    %cst_26 = arith.constant 1.000000e-16 : f32
    %94 = vector.broadcast %cst_26 : f32 to vector<16x1xf32>
    %95 = arith.addf %93, %94 : vector<16x1xf32>
    %cst_27 = arith.constant dense<0.000000e+00> : vector<16x32xf32>
    %96 = tpu.matmul %91, %11, %cst_27 {dimension_numbers = #tpu.dot_dimension_numbers<[1], [0], [0], [1], [0, 0, 1, 1], [], []>} : vector<16x16xf32>, vector<16x32xf32>, vector<16x32xf32> -> vector<16x32xf32>
    %97 = tpu.reciprocal %95 : vector<16x1xf32> -> vector<16x1xf32>
    %98 = vector.broadcast %97 : vector<16x1xf32> to vector<16x32xf32>
    %99 = arith.mulf %96, %98 : vector<16x32xf32>
    %c0_28 = arith.constant 0 : index
    %c0_29 = arith.constant 0 : index
    %c0_30 = arith.constant 0 : index
    %100 = vector.load %arg9[%c0_28, %c0_29, %c0_30] : memref<1x1x32xf32, #tpu.memory_space<vmem>>, vector<1x1x32xf32>
    %101 = vector.shape_cast %100 : vector<1x1x32xf32> to vector<1x32xf32>
    %102 = vector.broadcast %101 : vector<1x32xf32> to vector<16x32xf32>
    %103 = arith.addf %99, %102 : vector<16x32xf32>
    %cst_31 = arith.constant dense<0.000000e+00> : vector<16xf32>
    %104 = vector.multi_reduction <add>, %103, %cst_31 [1] : vector<16x32xf32> to vector<16xf32>
    %105 = vector.shape_cast %104 : vector<16xf32> to vector<16x1xf32>
    %cst_32 = arith.constant dense<0.000000e+00> : vector<1xf32>
    %106 = vector.multi_reduction <add>, %105, %cst_32 [0] : vector<16x1xf32> to vector<1xf32>
    %107 = vector.shape_cast %106 : vector<1xf32> to vector<1x1xf32>
    %cst_33 = arith.constant 0.001953125 : f32
    %108 = vector.broadcast %cst_33 : f32 to vector<1x1xf32>
    %109 = arith.mulf %107, %108 : vector<1x1xf32>
    %110 = vector.broadcast %109 : vector<1x1xf32> to vector<16x32xf32>
    %111 = arith.subf %103, %110 : vector<16x32xf32>
    %112 = arith.mulf %111, %111 : vector<16x32xf32>
    %cst_34 = arith.constant dense<0.000000e+00> : vector<16xf32>
    %113 = vector.multi_reduction <add>, %112, %cst_34 [1] : vector<16x32xf32> to vector<16xf32>
    %114 = vector.shape_cast %113 : vector<16xf32> to vector<16x1xf32>
    %cst_35 = arith.constant dense<0.000000e+00> : vector<1xf32>
    %115 = vector.multi_reduction <add>, %114, %cst_35 [0] : vector<16x1xf32> to vector<1xf32>
    %116 = vector.shape_cast %115 : vector<1xf32> to vector<1x1xf32>
    %cst_36 = arith.constant 0.001953125 : f32
    %117 = vector.broadcast %cst_36 : f32 to vector<1x1xf32>
    %118 = arith.mulf %116, %117 : vector<1x1xf32>
    %119 = math.sqrt %118 : vector<1x1xf32>
    %cst_37 = arith.constant 9.99999974E-6 : f32
    %120 = vector.broadcast %cst_37 : f32 to vector<1x1xf32>
    %121 = arith.addf %119, %120 : vector<1x1xf32>
    %122 = tpu.reciprocal %121 : vector<1x1xf32> -> vector<1x1xf32>
    %123 = vector.broadcast %122 : vector<1x1xf32> to vector<16x32xf32>
    %124 = arith.mulf %111, %123 : vector<16x32xf32>
    %c0_38 = arith.constant 0 : index
    %c0_39 = arith.constant 0 : index
    %c0_40 = arith.constant 0 : index
    %125 = vector.load %arg10[%c0_38, %c0_39, %c0_40] : memref<1x1x32xf32, #tpu.memory_space<vmem>>, vector<1x1x32xf32>
    %126 = vector.shape_cast %125 : vector<1x1x32xf32> to vector<1x32xf32>
    %127 = vector.broadcast %126 : vector<1x32xf32> to vector<16x32xf32>
    %128 = arith.mulf %124, %127 : vector<16x32xf32>
    %c0_41 = arith.constant 0 : index
    %c0_42 = arith.constant 0 : index
    %c0_43 = arith.constant 0 : index
    %129 = vector.load %arg11[%c0_41, %c0_42, %c0_43] : memref<1x1x32xf32, #tpu.memory_space<vmem>>, vector<1x1x32xf32>
    %130 = vector.shape_cast %129 : vector<1x1x32xf32> to vector<1x32xf32>
    %131 = vector.broadcast %130 : vector<1x32xf32> to vector<16x32xf32>
    %132 = arith.addf %128, %131 : vector<16x32xf32>
    %cst_44 = arith.constant 0.000000e+00 : f32
    %133 = vector.broadcast %cst_44 : f32 to vector<16x32xf32>
    %134 = arith.maximumf %132, %133 : vector<16x32xf32>
    %c0_45 = arith.constant 0 : index
    %c0_46 = arith.constant 0 : index
    %135 = vector.load %arg15[%c0_45, %c0_46] : memref<16x32xf32, #tpu.memory_space<vmem>>, vector<16x32xf32>
    tpu.vector_store %arg15[%c0_45, %c0_46], %134 {strides = array<i32>} : memref<16x32xf32, #tpu.memory_space<vmem>>, vector<16x32xf32>,
    %c3_i32 = arith.constant 3 : i32
    %136 = arith.cmpi eq, %arg0, %c3_i32 : i32
    %137 = arith.extui %136 : i1 to i32
    %c0_i32_47 = arith.constant 0 : i32
    %138 = arith.cmpi ne, %137, %c0_i32_47 : i32
    scf.if %138 {
      %c0_48 = arith.constant 0 : index
      %c0_49 = arith.constant 0 : index
      %139 = vector.load %arg4[%c0_48, %c0_49] : memref<2x16xf32, #tpu.memory_space<vmem>>, vector<2x16xf32>
      %cst_50 = arith.constant dense<0.000000e+00> : vector<2x32xf32>
      %140 = tpu.matmul %139, %134, %cst_50 {dimension_numbers = #tpu.dot_dimension_numbers<[1], [0], [0], [1], [0, 0, 1, 1], [], []>} : vector<2x16xf32>, vector<16x32xf32>, vector<2x32xf32> -> vector<2x32xf32>
      %c0_51 = arith.constant 0 : index
      %c0_52 = arith.constant 0 : index
      %141 = vector.load %arg12[%c0_51, %c0_52] : memref<32x32xf32, #tpu.memory_space<vmem>>, vector<32x32xf32>
      %cst_53 = arith.constant dense<0.000000e+00> : vector<2x32xf32>
      %142 = tpu.matmul %140, %141, %cst_53 {dimension_numbers = #tpu.dot_dimension_numbers<[1], [0], [0], [1], [0, 0, 1, 1], [], []>} : vector<2x32xf32>, vector<32x32xf32>, vector<2x32xf32> -> vector<2x32xf32>
      %c0_54 = arith.constant 0 : index
      %c0_55 = arith.constant 0 : index
      %143 = vector.load %arg13[%c0_54, %c0_55] : memref<1x32xf32, #tpu.memory_space<vmem>>, vector<1x32xf32>
      %144 = vector.broadcast %143 : vector<1x32xf32> to vector<2x32xf32>
      %145 = arith.addf %142, %144 : vector<2x32xf32>
      %c0_56 = arith.constant 0 : index
      %c0_57 = arith.constant 0 : index
      %146 = vector.load %arg14[%c0_56, %c0_57] : memref<2x32xf32, #tpu.memory_space<vmem>>, vector<2x32xf32>
      tpu.vector_store %arg14[%c0_56, %c0_57], %145 {strides = array<i32>} : memref<2x32xf32, #tpu.memory_space<vmem>>, vector<2x32xf32>,
    } else {
    }
    return
  }
  func.func @transform_0(%arg0: i32) -> (i32, i32) {
    %c0_i32 = arith.constant 0 : i32
    %c0_i32_0 = arith.constant 0 : i32
    %c0_i32_1 = arith.constant 0 : i32
    return %c0_i32, %c0_i32_0 : i32, i32
  }
  func.func @transform_1(%arg0: i32) -> (i32, i32) {
    %c0_i32 = arith.constant 0 : i32
    %c0_i32_0 = arith.constant 0 : i32
    %c0_i32_1 = arith.constant 0 : i32
    return %c0_i32, %c0_i32_0 : i32, i32
  }
  func.func @transform_2(%arg0: i32) -> (i32, i32) {
    %c0_i32 = arith.constant 0 : i32
    %c0_i32_0 = arith.constant 0 : i32
    %c0_i32_1 = arith.constant 0 : i32
    return %c0_i32, %c0_i32_0 : i32, i32
  }
  func.func @transform_3(%arg0: i32) -> (i32, i32) {
    %c0_i32 = arith.constant 0 : i32
    %c0_i32_0 = arith.constant 0 : i32
    %c0_i32_1 = arith.constant 0 : i32
    return %c0_i32, %c0_i32_0 : i32, i32
  }
  func.func @transform_4(%arg0: i32) -> (i32, i32, i32) {
    %c0_i32 = arith.constant 0 : i32
    %c0_i32_0 = arith.constant 0 : i32
    %c0_i32_1 = arith.constant 0 : i32
    return %arg0, %c0_i32, %c0_i32_0 : i32, i32, i32
  }
  func.func @transform_5(%arg0: i32) -> (i32, i32, i32) {
    %c0_i32 = arith.constant 0 : i32
    %c0_i32_0 = arith.constant 0 : i32
    %c0_i32_1 = arith.constant 0 : i32
    return %arg0, %c0_i32, %c0_i32_0 : i32, i32, i32
  }
  func.func @transform_6(%arg0: i32) -> (i32, i32, i32) {
    %c0_i32 = arith.constant 0 : i32
    %c0_i32_0 = arith.constant 0 : i32
    %c0_i32_1 = arith.constant 0 : i32
    return %arg0, %c0_i32, %c0_i32_0 : i32, i32, i32
  }
  func.func @transform_7(%arg0: i32) -> (i32, i32, i32) {
    %c0_i32 = arith.constant 0 : i32
    %c0_i32_0 = arith.constant 0 : i32
    %c0_i32_1 = arith.constant 0 : i32
    return %arg0, %c0_i32, %c0_i32_0 : i32, i32, i32
  }
  func.func @transform_8(%arg0: i32) -> (i32, i32, i32) {
    %c0_i32 = arith.constant 0 : i32
    %c0_i32_0 = arith.constant 0 : i32
    %c0_i32_1 = arith.constant 0 : i32
    return %arg0, %c0_i32, %c0_i32_0 : i32, i32, i32
  }
  func.func @transform_9(%arg0: i32) -> (i32, i32, i32) {
    %c0_i32 = arith.constant 0 : i32
    %c0_i32_0 = arith.constant 0 : i32
    %c0_i32_1 = arith.constant 0 : i32
    return %arg0, %c0_i32, %c0_i32_0 : i32, i32, i32
  }
  func.func @transform_10(%arg0: i32) -> (i32, i32, i32) {
    %c0_i32 = arith.constant 0 : i32
    %c0_i32_0 = arith.constant 0 : i32
    %c0_i32_1 = arith.constant 0 : i32
    return %arg0, %c0_i32, %c0_i32_0 : i32, i32, i32
  }
  func.func @transform_11(%arg0: i32) -> (i32, i32) {
    %c0_i32 = arith.constant 0 : i32
    %c0_i32_0 = arith.constant 0 : i32
    %c0_i32_1 = arith.constant 0 : i32
    return %c0_i32, %c0_i32_0 : i32, i32
  }
  func.func @transform_12(%arg0: i32) -> (i32, i32) {
    %c0_i32 = arith.constant 0 : i32
    %c0_i32_0 = arith.constant 0 : i32
    %c0_i32_1 = arith.constant 0 : i32
    return %c0_i32, %c0_i32_0 : i32, i32
  }
  func.func @transform_13(%arg0: i32) -> (i32, i32) {
    %c0_i32 = arith.constant 0 : i32
    %c0_i32_0 = arith.constant 0 : i32
    %c0_i32_1 = arith.constant 0 : i32
    return %c0_i32, %c0_i32_0 : i32, i32
  }
}

</mosaic_0001>

<bundles_post_ra>
// kernel: tpu_custom_call.1
= control target key start
LH: loop header
LB: loop body
LE: loop exit
PB: predicated region body
PF: predicated region fallthrough
CT: control target
= control target key end

     0   :  { %s2337_s0 = inlined_call_operand.vmem [shape: f32[16,32], index: 0, kind: input, shape index: {}]   ;;  %s2338_s1 = inlined_call_operand.vmem [shape: f32[256,6], index: 1, kind: input, shape index: {}]   ;;  %s2339_s2 = inlined_call_operand.vmem [shape: f32[16,16], index: 2, kind: input, shape index: {}]   ;;  %s2340_s3 = inlined_call_operand.vmem [shape: f32[2,16], index: 3, kind: input, shape index: {}]   ;;  %s2341_s4 = inlined_call_operand.vmem [shape: f32[4,32,64], index: 4, kind: input, shape index: {}]   ;;  %s2342_s5 = inlined_call_operand.vmem [shape: f32[4,1,64], index: 5, kind: input, shape index: {}]   ;;  %s2343_s6 = inlined_call_operand.vmem [shape: f32[4,6,32], index: 6, kind: input, shape index: {}]   ;;  %s2344_s7 = inlined_call_operand.vmem [shape: f32[4,1,32], index: 7, kind: input, shape index: {}]   ;;  %s2345_s8 = inlined_call_operand.vmem [shape: f32[4,1,32], index: 8, kind: input, shape index: {}]   ;;  %s2346_s9 = inlined_call_operand.vmem [shape: f32[4,1,32], index: 9, kind: input, shape index: {}]   ;;  %s2347_s10 = inlined_call_operand.vmem [shape: f32[4,1,32], index: 10, kind: input, shape index: {}]   ;;  %s2348_s11 = inlined_call_operand.vmem [shape: f32[32,32], index: 11, kind: input, shape index: {}]   ;;  %s2349_s12 = inlined_call_operand.vmem [shape: f32[1,32], index: 12, kind: input, shape index: {}]   ;;  %s2350_s13 = inlined_call_operand.hbm [shape: f32[2,32], index: 13, kind: output, shape index: {}]  }
   0x1   :  { %2352 = sst [smem:[#allocation7_spill]] %s2349_s12 }
   0x2   :  { %2353 = sst [smem:[#allocation8_spill]] %s2350_s13 }
   0x3   :  { %18 = vsyncpa [#allocation4], 0  ;;  %s1826_s25 = smov 0  }
   0x4 LB: > { %2354 = sst [smem:[#allocation6_spill]] %s1752_s25  ;;  %s1832_s26 = sadd.s32 4294967295, %s1752_s25   ;;  %s1752_s25 = sphi %s1826_s25, %s24_s25  }
   0x5   : > { %p1627_p0 = scmp.ge.s32.totalorder %s1752_s25, 1  ;;  %p432_p1 = scmp.lt.s32.totalorder %s1752_s25, 5 }
   0x7   : > { %p433_p2 = pnand %p1627_p0, %p432_p1 }
   0x8   : > { %p490_p3 = scmp.lt.s32.totalorder (!%p433_p2), %s1832_s26, 3  ;;  %p1631_p4 = scmp.ne.s32.totalorder (!%p433_p2), %s1832_s26, 0 }
   0x9   : > { %436 = sbr.rel (%p433_p2) target bundleno = 1345 (0x541), region = 72 }
   0xe   : > { %s1838_s27 = scalar_select %p490_p3, %s1832_s26, 3 }
   0xf   : > { %517 = sbr.rel (%p1631_p4) target bundleno = 23 (0x17), region = 76 }
  0x10   : > { %s1676_s28 = sshll.u32 %s1838_s27, 5  ;;  %s1630_s18 = sshll.u32 %s1838_s27, 3 }
  0x11   : > { %s1848_s17 = scalar_lea.vmem %s2341_s4, %s1676_s28  ;;  %s501_s21 = scalar_lea.vmem %s2343_s6, %s1630_s18 }
  0x12   : > { %s504_s24 = scalar_lea.vmem %s2344_s7, %s1838_s27  ;;  %s507_s12 = scalar_lea.vmem %s2345_s8, %s1838_s27 }
  0x13   : > { %s510_s14 = scalar_lea.vmem %s2346_s9, %s1838_s27  ;;  %s513_s16 = scalar_lea.vmem %s2347_s10, %s1838_s27 }
  0x14   : > { %v518_v0 = vld [vmem:[%s2337_s0] sm:$0xff]  ;;  %vm520_vm0 = vcmask 261120   ;;  %v519_v1 = vld [vmem:[%s2337_s0 + $0x8] sm:$0xff] }
  0x15   : > { %521 = vst.msk [vmem:[#allocation2] sm:$0xff] %vm520_vm0, %v518_v0 }
  0x16   : > { %522 = vst.msk [vmem:[#allocation2 + $0x8] sm:$0xff] %vm520_vm0, %v519_v1 }
  0x17 PF: > { %v528_v2 = vld [vmem:[%s1848_s17 + $0x18] sm:$0xff]  ;;  %v595_v3 = vld [vmem:[%s501_s21] sm:$0x3f]  ;;  %vm693_vm1 = vcmask 1045504   ;;  %vm596_vm2 = vcmask 48128   ;;  %v577_v5 = vld [vmem:[%s2338_s1 + $0x70] sm:$0xff]  ;;  %s2355_s25 = scalar_lea.vmem %s2342_s5, %s1838_s27 }
  0x18   : > { %v567_v4 = vld [vmem:[%s2338_s1 + $0x20] sm:$0xff]  ;;  %552 = vmatpush.msra.mxu0 %v528_v2  ;;  %1677 = vmatpush.msk.msra.mxu1 %vm693_vm1, %v595_v3  ;;  %v585_v6 = vld [vmem:[%s2338_s1 + $0xb0] sm:$0xff]  ;;  %v526_v8 = vld [vmem:[%s1848_s17 + $0x8] sm:$0xff]  ;;  %vm533_vm3 = vcmask 261120   ;;  %s1754_s23 = smov 96   ;;  %p1669_p5 = scmp.ne.s32.totalorder %s1832_s26, 3 }
  0x19   : > { %v527_v7 = vld [vmem:[%s1848_s17 + $0x10] sm:$0xff]  ;;  %1678 = vmatpush.msk.msra.mxu2 %vm693_vm1, %v595_v3  ;;  %1679 = vmatpush.msk.msra.mxu3 %vm693_vm1, %v595_v3  ;;  %v525_v9 = vld [vmem:[%s1848_s17] sm:$0xff]  ;;  %v568_v11 = vld [vmem:[%s2338_s1 + $0x28] sm:$0xff]  ;;  %s2356_s18 = sld [smem:[#allocation7_spill]] (!%p1669_p5) }
  0x1a   : > { %1639 = vmatmul.msk.f32.vlgmr.msra.gmra.mxu1 %vm596_vm2, %v567_v4  ;;  %1649 = vmatmul.msk.f32.vlgmr.msra.gmra.mxu2 %vm596_vm2, %v577_v5  ;;  %v578_v12 = vld [vmem:[%s2338_s1 + $0x78] sm:$0xff]  ;;  %v569_v15 = vld [vmem:[%s2338_s1 + $0x30] sm:$0xff]  ;;  %v579_v16 = vld [vmem:[%s2338_s1 + $0x80] sm:$0xff] }
  0x1b   : > { %1657 = vmatmul.msk.f32.vlgmr.msra.gmra.mxu3 %vm596_vm2, %v585_v6  ;;  %553 = vmatpush.msra.mxu0 %v527_v7  ;;  %v586_v13 = vld [vmem:[%s2338_s1 + $0xb8] sm:$0xff]  ;;  %v587_v17 = vld [vmem:[%s2338_s1 + $0xc0] sm:$0xff]  ;;  %v580_v20 = vld [vmem:[%s2338_s1 + $0x88] sm:$0xff] }
  0x1c   : > { %v523_v10 = vld [vmem:[#allocation2] sm:$0xff]  ;;  %v570_v19 = vld [vmem:[%s2338_s1 + $0x38] sm:$0xff]  ;;  %v588_v21 = vld [vmem:[%s2338_s1 + $0xc8] sm:$0xff] }
  0x1d   : > { %554 = vmatpush.msra.mxu0 %v526_v8  ;;  %v524_v14 = vld [vmem:[#allocation2 + $0x8] sm:$0xff]  ;;  %v563_v18 = vld [vmem:[%s2338_s1] sm:$0xff]  ;;  %v581_v24 = vld [vmem:[%s2338_s1 + $0x90] sm:$0xff] }
  0x1e   : > { %v564_v22 = vld [vmem:[%s2338_s1 + $0x8] sm:$0xff]  ;;  %v571_v23 = vld [vmem:[%s2338_s1 + $0x40] sm:$0xff]  ;;  %v589_v25 = vld [vmem:[%s2338_s1 + $0xd0] sm:$0xff] }
  0x1f   : > { %555 = vmatpush.msra.mxu0 %v525_v9  ;;  %v565_v26 = vld [vmem:[%s2338_s1 + $0x10] sm:$0xff]  ;;  %v572_v27 = vld [vmem:[%s2338_s1 + $0x48] sm:$0xff]  ;;  %v582_v28 = vld [vmem:[%s2338_s1 + $0x98] sm:$0xff] }
  0x20   : > { %1632 = vmatmul.msk.f32.vlgmr.msra.gmra.mxu0 %vm533_vm3, %v523_v10  ;;  %v590_v29 = vld [vmem:[%s2338_s1 + $0xd8] sm:$0xff]  ;;  %v573_v31 = vld [vmem:[%s2338_s1 + $0x50] sm:$0xff]  ;;  %v583_v32 = vld [vmem:[%s2338_s1 + $0xa0] sm:$0xff] }
  0x21   : > { %1634 = vmatpush.msk.msrb.mxu0 %vm693_vm1, %v595_v3  ;;  %v566_v30 = vld [vmem:[%s2338_s1 + $0x18] sm:$0xff]  ;;  %v591_v33 = vld [vmem:[%s2338_s1 + $0xe0] sm:$0xff]  ;;  %v584_v35 = vld [vmem:[%s2338_s1 + $0xa8] sm:$0xff] }
  0x22   : > { %1640 = vmatmul.msk.f32.gmra.mxu1 %vm596_vm2, %v568_v11  ;;  %1650 = vmatmul.msk.f32.gmra.mxu2 %vm596_vm2, %v578_v12  ;;  %v574_v34 = vld [vmem:[%s2338_s1 + $0x58] sm:$0xff]  ;;  %v592_v36 = vld [vmem:[%s2338_s1 + $0xe8] sm:$0xff]  ;;  %v575_v37 = vld [vmem:[%s2338_s1 + $0x60] sm:$0xff] }
  0x23   : > { %1658 = vmatmul.msk.f32.gmra.mxu3 %vm596_vm2, %v586_v13  ;;  %v593_v38 = vld [vmem:[%s2338_s1 + $0xf0] sm:$0xff]  ;;  %v576_v39 = vld [vmem:[%s2338_s1 + $0x68] sm:$0xff]  ;;  %v594_v40 = vld [vmem:[%s2338_s1 + $0xf8] sm:$0xff] }
  0x24   : > { %v1696_v41 = vld [vmem:[%s2355_s25] ss:$0 sm:$0xff] }
  0x28   : > { %1633 = vmatmul.msk.f32.gmra.mxu0 %vm533_vm3, %v524_v14 }
  0x2a   : > { %1641 = vmatmul.msk.f32.gmra.mxu1 %vm596_vm2, %v569_v15  ;;  %1651 = vmatmul.msk.f32.gmra.mxu2 %vm596_vm2, %v579_v16 }
  0x2b   : > { %1659 = vmatmul.msk.f32.gmra.mxu3 %vm596_vm2, %v587_v17 }
  0x30   : > { %1635 = vmatmul.msk.f32.vlgmr.msrb.gmra.mxu0 %vm596_vm2, %v563_v18 }
  0x32   : > { %1642 = vmatmul.msk.f32.gmra.mxu1 %vm596_vm2, %v570_v19  ;;  %1652 = vmatmul.msk.f32.gmra.mxu2 %vm596_vm2, %v580_v20 }
  0x33   : > { %1660 = vmatmul.msk.f32.gmra.mxu3 %vm596_vm2, %v588_v21 }
  0x38   : > { %1636 = vmatmul.msk.f32.gmra.mxu0 %vm596_vm2, %v564_v22 }
  0x3a   : > { %1643 = vmatmul.msk.f32.gmra.mxu1 %vm596_vm2, %v571_v23  ;;  %1653 = vmatmul.msk.f32.gmra.mxu2 %vm596_vm2, %v581_v24 }
  0x3b   : > { %1661 = vmatmul.msk.f32.gmra.mxu3 %vm596_vm2, %v589_v25 }
  0x40   : > { %1637 = vmatmul.msk.f32.gmra.mxu0 %vm596_vm2, %v565_v26 }
  0x42   : > { %1644 = vmatmul.msk.f32.gmra.mxu1 %vm596_vm2, %v572_v27  ;;  %1654 = vmatmul.msk.f32.gmra.mxu2 %vm596_vm2, %v582_v28  ;;  %v2086_v27 = vld [vmem:[%s504_s24] ss:$0 sm:$0xff] }
  0x43   : > { %1662 = vmatmul.msk.f32.gmra.mxu3 %vm596_vm2, %v590_v29 }
  0x48   : > { %1638 = vmatmul.msk.f32.gmra.mxu0 %vm596_vm2, %v566_v30 }
  0x4a   : > { %1645 = vmatmul.msk.f32.gmra.mxu1 %vm596_vm2, %v573_v31  ;;  %1655 = vmatmul.msk.f32.gmra.mxu2 %vm596_vm2, %v583_v32 }
  0x4b   : > { %1663 = vmatmul.msk.f32.gmra.mxu3 %vm596_vm2, %v591_v33 }
  0x52   : > { %1646 = vmatmul.msk.f32.gmra.mxu1 %vm596_vm2, %v574_v34  ;;  %1656 = vmatmul.msk.f32.gmra.mxu2 %vm596_vm2, %v584_v35 }
  0x53   : > { %1664 = vmatmul.msk.f32.gmra.mxu3 %vm596_vm2, %v592_v36 }
  0x5a   : > { %1647 = vmatmul.msk.f32.gmra.mxu1 %vm596_vm2, %v575_v37 }
  0x5b   : > { %1665 = vmatmul.msk.f32.gmra.mxu3 %vm596_vm2, %v593_v38 }
  0x62   : > { %1648 = vmatmul.msk.f32.gmra.mxu1 %vm596_vm2, %v576_v39 }
  0x63   : > { %1666 = vmatmul.msk.f32.gmra.mxu3 %vm596_vm2, %v594_v40 }
  0x97   : > { %v726_v62 = vpop.f32.mrf.mxu1 }
  0x9d   : > { %v557_v42 = vpop.f32.mrf.mxu0  ;;  %v2060_v3 = vpop.f32.mrf.mxu2 }
  0x9e   : > { %v2020_v43 = vadd.f32 %v1696_v41, %v557_v42  ;;  %v2062_v5 = vpop.f32.mrf.mxu3 }
  0x9f   : > { %v729_v63 = vpop.f32.mrf.mxu1 }
  0xa0   : > { %v814_v44 = vperm.slane %v2020_v43, 4  ;;  %v812_v45 = vperm.slane %v2020_v43, 2  ;;  %v810_v46 = vperm.slane %v2020_v43, 0  ;;  %v815_v49 = vperm.slane %v2020_v43, 5 }
  0xa1   : > { %v813_v50 = vperm.slane %v2020_v43, 3  ;;  %v811_v51 = vperm.slane %v2020_v43, 1  ;;  %v817_v53 = vperm.slane %v2020_v43, 7  ;;  %v816_v54 = vperm.slane %v2020_v43, 6 }
  0xa2   : > { %882 = vrot.lane.b32.xlu2 %v814_v44, %s1754_s23  ;;  %878 = vrot.lane.b32.xlu1 %v812_v45, %s1754_s23  ;;  %v846_v17 = vadd.f32 %v726_v62, %v2020_v43 }
  0xa3   : > { %874 = vrot.lane.b32.xlu0 %v810_v46, %s1754_s23 }
  0xa5   : > { %v560_v47 = vpop.f32.mrf.mxu0  ;;  %v2064_v7 = vpop.f32.mrf.mxu2 }
  0xa6   : > { %v2028_v48 = vadd.f32 %v1696_v41, %v560_v47  ;;  %v2066_v9 = vpop.f32.mrf.mxu3 }
  0xa7   : > { %v732_v0 = vpop.f32.mrf.mxu1 }
  0xa8   : > { %1336 = vmatpush.msrb.mxu2 %v2028_v48  ;;  %v818_v52 = vperm.slane %v2028_v48, 0  ;;  %v821_v55 = vperm.slane %v2028_v48, 3  ;;  %v820_v56 = vperm.slane %v2028_v48, 2  ;;  %v819_v57 = vperm.slane %v2028_v48, 1 }
  0xa9   : > { %v824_v58 = vperm.slane %v2028_v48, 6  ;;  %v823_v59 = vperm.slane %v2028_v48, 5  ;;  %v822_v60 = vperm.slane %v2028_v48, 4  ;;  %v825_v61 = vperm.slane %v2028_v48, 7 }
  0xaa   : > { %1337 = vmatpush.msrb.mxu2 %v2020_v43  ;;  %884 = vrot.lane.b32.xlu2 %v815_v49, %s1754_s23  ;;  %v848_v34 = vadd.f32 %v732_v0, %v2020_v43  ;;  %v847_v44 = vadd.f32 %v729_v63, %v2028_v48 }
  0xab   : > { %880 = vrot.lane.b32.xlu1 %v813_v50, %s1754_s23  ;;  %876 = vrot.lane.b32.xlu0 %v811_v51, %s1754_s23 }
  0xad   : > { %v714_v4 = vpop.f32.mrf.mxu0  ;;  %v2070_v11 = vpop.f32.mrf.mxu2 }
  0xae   : > { %v842_v13 = vadd.f32 %v714_v4, %v2020_v43  ;;  %v2073_v14 = vpop.f32.mrf.mxu3 }
  0xaf   : > { %v735_v1 = vpop.f32.mrf.mxu1 }
  0xb0   : > { %v849_v37 = vadd.f32 %v735_v1, %v2028_v48 }
  0xb2   : > { %890 = vrot.lane.b32.xlu2 %v818_v52, %s1754_s23 }
  0xb3   : > { %888 = vrot.lane.b32.xlu1 %v817_v53, %s1754_s23  ;;  %886 = vrot.lane.b32.xlu0 %v816_v54, %s1754_s23 }
  0xb5   : > { %v717_v8 = vpop.f32.mrf.mxu0  ;;  %v2079_v25 = vpop.f32.mrf.mxu2 }
  0xb6   : > { %v843_v15 = vadd.f32 %v717_v8, %v2028_v48  ;;  %v2096_v42 = vpop.f32.mrf.mxu3 }
  0xb7   : > { %v2058_v2 = vpop.f32.mrf.mxu1 }
  0xba   : > { %896 = vrot.lane.b32.xlu2 %v821_v55, %s1754_s23 }
  0xbb   : > { %894 = vrot.lane.b32.xlu1 %v820_v56, %s1754_s23  ;;  %892 = vrot.lane.b32.xlu0 %v819_v57, %s1754_s23 }
  0xbd   : > { %v720_v12 = vpop.f32.mrf.mxu0 }
  0xbe   : > { %v844_v35 = vadd.f32 %v720_v12, %v2020_v43  ;;  %v850_v12 = vadd.f32 %v2058_v2, %v2020_v43 }
  0xbf   : > { %v741_v6 = vpop.f32.mrf.mxu1 }
  0xc0   : > { %v851_v62 = vadd.f32 %v741_v6, %v2028_v48 }
  0xc2   : > { %902 = vrot.lane.b32.xlu2 %v824_v58, %s1754_s23  ;;  %v2100_v58 = vpop.f32.mrf.mxu2 }
  0xc3   : > { %900 = vrot.lane.b32.xlu1 %v823_v59, %s1754_s23  ;;  %898 = vrot.lane.b32.xlu0 %v822_v60, %s1754_s23 }
  0xc5   : > { %v723_v26 = vpop.f32.mrf.mxu0 }
  0xc6   : > { %v845_v36 = vadd.f32 %v723_v26, %v2028_v48 }
  0xc7   : > { %v2068_v10 = vpop.f32.mrf.mxu1 }
  0xc8   : > { %v852_v4 = vadd.f32 %v2068_v10, %v2020_v43 }
  0xcb   : > { %904 = vrot.lane.b32.xlu0 %v825_v61, %s1754_s23 }
  0xcf   : > { %v2077_v19 = vpop.f32.mrf.mxu1 }
  0xd7   : > { %v750_v51 = vpop.f32.mrf.mxu1 }
  0xfc   : > { %v883_v28 = vpop.permute.xlu2 %882 }
 0x104   : > { %v885_v63 = vpop.permute.xlu2 %884 }
 0x105   : > { %v932_v6 = vadd.f32 %v885_v63, %v852_v4 }
 0x107   : > { %v996_v26 = vmul.f32 0.2, %v932_v6  ;;  %vm964_vm13 = vcmp.gt.f32.partialorder %v932_v6, 0.0 }
 0x114   : > { %v879_v16 = vpop.permute.xlu1 %878 }
 0x115   : > { %v875_v18 = vpop.permute.xlu0 %874  ;;  %v926_v22 = vadd.f32 %v879_v16, %v846_v17  ;;  %v927_v52 = vadd.f32 %v879_v16, %v847_v44 }
 0x116   : > { %v922_v20 = vadd.f32 %v875_v18, %v842_v13  ;;  %v923_v21 = vadd.f32 %v875_v18, %v843_v15  ;;  %v931_v13 = vadd.f32 %v883_v28, %v851_v62 }
 0x117   : > { %v990_v31 = vmul.f32 0.2, %v926_v22  ;;  %vm958_vm6 = vcmp.gt.f32.partialorder %v926_v22, 0.0  ;;  %v991_v0 = vmul.f32 0.2, %v927_v52  ;;  %vm959_vm11 = vcmp.gt.f32.partialorder %v927_v52, 0.0 }
 0x118   : > { %v986_v23 = vmul.f32 0.2, %v922_v20  ;;  %v987_v24 = vmul.f32 0.2, %v923_v21  ;;  %vm955_vm4 = vcmp.gt.f32.partialorder %v923_v21, 0.0  ;;  %vm954_vm5 = vcmp.gt.f32.partialorder %v922_v20, 0.0 }
 0x119   : > { %v1022_v50 = vsel %vm958_vm6, %v926_v22, %v990_v31  ;;  %v1023_v10 = vsel %vm959_vm11, %v927_v52, %v991_v0  ;;  %vm963_vm12 = vcmp.gt.f32.partialorder %v931_v13, 0.0  ;;  %v854_v31 = vadd.f32 %v750_v51, %v2020_v43 }
 0x11a   : > { %v1019_v29 = vsel %vm955_vm4, %v923_v21, %v987_v24  ;;  %v1018_v30 = vsel %vm954_vm5, %v922_v20, %v986_v23  ;;  %v1058_v56 = vmul.f32 %v2086_v27, %v1022_v50  ;;  %v2112_v20 = vpop.f32.mrf.mxu3  ;;  %v930_v21 = vadd.f32 %v883_v28, %v850_v12  ;;  %v753_v23 = vpop.f32.mrf.mxu1 }
 0x11b   : > { %v1055_v32 = vmul.f32 %v2086_v27, %v1019_v29  ;;  %v1054_v33 = vmul.f32 %v2086_v27, %v1018_v30  ;;  %v995_v24 = vmul.f32 0.2, %v931_v13  ;;  %v1059_v30 = vmul.f32 %v2086_v27, %v1023_v10 }
 0x11c   : > { %v1098_v15 = vsel %vm533_vm3, %v1058_v56, 0.0  ;;  %v855_v28 = vadd.f32 %v753_v23, %v2028_v48  ;;  %vm962_vm14 = vcmp.gt.f32.partialorder %v930_v21, 0.0  ;;  %v858_v56 = vadd.f32 %v2070_v11, %v2020_v43 }
 0x11d   : > { %v881_v38 = vpop.permute.xlu1 %880  ;;  %v877_v39 = vpop.permute.xlu0 %876  ;;  %v1089_v40 = vsel %vm533_vm3, %v1055_v32, 0.0  ;;  %v1086_v41 = vsel %vm533_vm3, %v1054_v33, 0.0  ;;  %v994_v32 = vmul.f32 0.2, %v930_v21 }
 0x11e   : > { %v928_v45 = vadd.f32 %v881_v38, %v848_v34  ;;  %v924_v46 = vadd.f32 %v877_v39, %v844_v35  ;;  %v925_v47 = vadd.f32 %v877_v39, %v845_v36  ;;  %1090 = vadd.xlane.f32.xlu2 %v1089_v40  ;;  %v929_v49 = vadd.f32 %v881_v38, %v849_v37  ;;  %v771_v33 = vpop.f32.mrf.mxu2 }
 0x11f   : > { %1087 = vadd.xlane.f32.xlu1 %v1086_v41  ;;  %v853_v35 = vadd.f32 %v2077_v19, %v2028_v48  ;;  %v1027_v38 = vsel %vm963_vm12, %v931_v13, %v995_v24  ;;  %v1101_v40 = vsel %vm533_vm3, %v1059_v30, 0.0  ;;  %v1028_v41 = vsel %vm964_vm13, %v932_v6, %v996_v26 }
 0x120   : > { %v988_v53 = vmul.f32 0.2, %v924_v46  ;;  %v989_v54 = vmul.f32 0.2, %v925_v47  ;;  %vm957_vm7 = vcmp.gt.f32.partialorder %v925_v47, 0.0  ;;  %vm956_vm8 = vcmp.gt.f32.partialorder %v924_v46, 0.0 }
 0x121   : > { %v992_v55 = vmul.f32 0.2, %v928_v45  ;;  %v993_v59 = vmul.f32 0.2, %v929_v49  ;;  %vm960_vm9 = vcmp.gt.f32.partialorder %v928_v45, 0.0  ;;  %vm961_vm10 = vcmp.gt.f32.partialorder %v929_v49, 0.0 }
 0x122   : > { %v1020_v57 = vsel %vm956_vm8, %v924_v46, %v988_v53  ;;  %v1021_v60 = vsel %vm957_vm7, %v925_v47, %v989_v54  ;;  %v933_v44 = vadd.f32 %v885_v63, %v853_v35  ;;  %v1063_v46 = vmul.f32 %v2086_v27, %v1027_v38  ;;  %v2125_v47 = vpop.f32.mrf.mxu3 }
 0x123   : > { %v1056_v61 = vmul.f32 %v2086_v27, %v1020_v57  ;;  %v1057_v1 = vmul.f32 %v2086_v27, %v1021_v60  ;;  %v1024_v16 = vsel %vm960_vm9, %v928_v45, %v992_v55  ;;  %v1025_v18 = vsel %vm961_vm10, %v929_v49, %v993_v59  ;;  %v891_v55 = vpop.permute.xlu2 %890 }
 0x124   : > { %v1060_v22 = vmul.f32 %v2086_v27, %v1024_v16  ;;  %v1061_v2 = vmul.f32 %v2086_v27, %v1025_v18  ;;  %v1026_v45 = vsel %vm962_vm14, %v930_v21, %v994_v32  ;;  %v1064_v19 = vmul.f32 %v2086_v27, %v1028_v41 }
 0x125   : > { %v1092_v8 = vsel %vm533_vm3, %v1056_v61, 0.0  ;;  %v1095_v17 = vsel %vm533_vm3, %v1057_v1, 0.0  ;;  %v887_v29 = vpop.permute.xlu0 %886  ;;  %v889_v50 = vpop.permute.xlu1 %888  ;;  %v1062_v52 = vmul.f32 %v2086_v27, %v1026_v45  ;;  %v857_v53 = vadd.f32 %v2064_v7, %v2028_v48 }
 0x126   : > { %1093 = vadd.xlane.f32.xlu0 %v1092_v8  ;;  %1096 = vadd.xlane.f32.xlu2 %v1095_v17  ;;  %v1104_v34 = vsel %vm533_vm3, %v1060_v22, 0.0  ;;  %v934_v36 = vadd.f32 %v887_v29, %v854_v31  ;;  %v1107_v37 = vsel %vm533_vm3, %v1061_v2, 0.0  ;;  %v935_v39 = vadd.f32 %v887_v29, %v855_v28  ;;  %v774_v63 = vpop.f32.mrf.mxu2 }
 0x127   : > { %1099 = vadd.xlane.f32.xlu1 %v1098_v15  ;;  %v997_v54 = vmul.f32 0.2, %v933_v44  ;;  %v1113_v57 = vsel %vm533_vm3, %v1063_v46, 0.0  ;;  %vm965_vm1 = vcmp.gt.f32.partialorder %v933_v44, 0.0  ;;  %v856_v59 = vadd.f32 %v2060_v3, %v2020_v43 }
 0x128   : > { %v998_v49 = vmul.f32 0.2, %v934_v36  ;;  %v999_v51 = vmul.f32 0.2, %v935_v39  ;;  %vm966_vm15 = vcmp.gt.f32.partialorder %v934_v36, 0.0  ;;  %vm967_vm0 = vcmp.gt.f32.partialorder %v935_v39, 0.0 }
 0x129   : > { %v937_v60 = vadd.f32 %v889_v50, %v857_v53  ;;  %v1116_v61 = vsel %vm533_vm3, %v1064_v19, 0.0  ;;  %v938_v0 = vadd.f32 %v891_v55, %v858_v56  ;;  %v1110_v7 = vsel %vm533_vm3, %v1062_v52, 0.0 }
 0x12a   : > { %v1030_v62 = vsel %vm966_vm15, %v934_v36, %v998_v49  ;;  %v1031_v1 = vsel %vm967_vm0, %v935_v39, %v999_v51  ;;  %v936_v4 = vadd.f32 %v889_v50, %v856_v59  ;;  %v1029_v11 = vsel %vm965_vm1, %v933_v44, %v997_v54  ;;  %v2143_v17 = vpop.f32.mrf.mxu3 }
 0x12b   : > { %v1066_v8 = vmul.f32 %v2086_v27, %v1030_v62  ;;  %v1001_v12 = vmul.f32 0.2, %v937_v60  ;;  %v1067_v13 = vmul.f32 %v2086_v27, %v1031_v1  ;;  %v1002_v3 = vmul.f32 0.2, %v938_v0  ;;  %v897_v39 = vpop.permute.xlu2 %896 }
 0x12c   : > { %v1065_v16 = vmul.f32 %v2086_v27, %v1029_v11  ;;  %vm969_vm2 = vcmp.gt.f32.partialorder %v937_v60, 0.0  ;;  %v860_v6 = vadd.f32 %v2100_v58, %v2020_v43  ;;  %v1000_v18 = vmul.f32 0.2, %v936_v4 }
 0x12d   : > { %v893_v15 = vpop.permute.xlu0 %892  ;;  %vm970_vm4 = vcmp.gt.f32.partialorder %v938_v0, 0.0  ;;  %v861_v21 = vadd.f32 %v771_v33, %v2028_v48  ;;  %v1122_v10 = vsel %vm533_vm3, %v1066_v8, 0.0  ;;  %vm968_vm5 = vcmp.gt.f32.partialorder %v936_v4, 0.0 }
 0x12e   : > { %1105 = vadd.xlane.f32.xlu0 %v1104_v34  ;;  %1102 = vadd.xlane.f32.xlu2 %v1101_v40  ;;  %v859_v22 = vadd.f32 %v2079_v25, %v2028_v48  ;;  %v940_v23 = vadd.f32 %v893_v15, %v860_v6  ;;  %v1125_v24 = vsel %vm533_vm3, %v1067_v13, 0.0  ;;  %v1033_v2 = vsel %vm969_vm2, %v937_v60, %v1001_v12  ;;  %v777_v32 = vpop.f32.mrf.mxu2  ;;  %v895_v25 = vpop.permute.xlu1 %894 }
 0x12f   : > { %1108 = vadd.xlane.f32.xlu1 %v1107_v37  ;;  %v941_v26 = vadd.f32 %v893_v15, %v861_v21  ;;  %v1119_v58 = vsel %vm533_vm3, %v1065_v16, 0.0  ;;  %v1034_v29 = vsel %vm970_vm4, %v938_v0, %v1002_v3  ;;  %v1032_v31 = vsel %vm968_vm5, %v936_v4, %v1000_v18 }
 0x130   : > { %v939_v30 = vadd.f32 %v891_v55, %v859_v22  ;;  %v1069_v33 = vmul.f32 %v2086_v27, %v1033_v2  ;;  %v1004_v28 = vmul.f32 0.2, %v940_v23  ;;  %v1070_v34 = vmul.f32 %v2086_v27, %v1034_v29 }
 0x131   : > { %v1005_v35 = vmul.f32 0.2, %v941_v26  ;;  %v1068_v36 = vmul.f32 %v2086_v27, %v1032_v31  ;;  %vm972_vm6 = vcmp.gt.f32.partialorder %v940_v23, 0.0  ;;  %v863_v37 = vadd.f32 %v777_v32, %v2028_v48 }
 0x132   : > { %v1003_v38 = vmul.f32 0.2, %v939_v30  ;;  %vm973_vm7 = vcmp.gt.f32.partialorder %v941_v26, 0.0  ;;  %v864_v40 = vadd.f32 %v2062_v5, %v2020_v43  ;;  %v1131_v41 = vsel %vm533_vm3, %v1069_v33, 0.0  ;;  %v2159_v45 = vpop.f32.mrf.mxu3 }
 0x133   : > { %vm971_vm8 = vcmp.gt.f32.partialorder %v939_v30, 0.0  ;;  %v862_v44 = vadd.f32 %v774_v63, %v2020_v43  ;;  %v943_v46 = vadd.f32 %v895_v25, %v863_v37  ;;  %v1134_v49 = vsel %vm533_vm3, %v1070_v34, 0.0 }
 0x134   : > { %v1036_v19 = vsel %vm972_vm6, %v940_v23, %v1004_v28  ;;  %v944_v50 = vadd.f32 %v897_v39, %v864_v40  ;;  %v1128_v51 = vsel %vm533_vm3, %v1068_v36, 0.0  ;;  %v1037_v52 = vsel %vm973_vm7, %v941_v26, %v1005_v35  ;;  %v903_v23 = vpop.permute.xlu2 %902 }
 0x135   : > { %v942_v53 = vadd.f32 %v895_v25, %v862_v44  ;;  %v1035_v5 = vsel %vm971_vm8, %v939_v30, %v1003_v38  ;;  %v1072_v54 = vmul.f32 %v2086_v27, %v1036_v19  ;;  %v1007_v55 = vmul.f32 0.2, %v943_v46  ;;  %v899_v59 = vpop.permute.xlu0 %898 }
 0x136   : > { %1114 = vadd.xlane.f32.xlu0 %v1113_v57  ;;  %1111 = vadd.xlane.f32.xlu2 %v1110_v7  ;;  %v1073_v56 = vmul.f32 %v2086_v27, %v1037_v52  ;;  %v1008_v57 = vmul.f32 0.2, %v944_v50  ;;  %v1071_v60 = vmul.f32 %v2086_v27, %v1035_v5  ;;  %vm975_vm9 = vcmp.gt.f32.partialorder %v943_v46, 0.0 }
 0x137   : > { %1117 = vadd.xlane.f32.xlu1 %v1116_v61  ;;  %v866_v61 = vadd.f32 %v2073_v14, %v2020_v43  ;;  %v1006_v62 = vmul.f32 0.2, %v942_v53  ;;  %vm976_vm10 = vcmp.gt.f32.partialorder %v944_v50, 0.0  ;;  %v867_v63 = vadd.f32 %v2096_v42, %v2028_v48 }
 0x138   : > { %v1140_v0 = vsel %vm533_vm3, %v1072_v54, 0.0  ;;  %vm974_vm11 = vcmp.gt.f32.partialorder %v942_v53, 0.0  ;;  %v865_v7 = vadd.f32 %v2066_v9, %v2028_v48  ;;  %v1143_v4 = vsel %vm533_vm3, %v1073_v56, 0.0  ;;  %v901_v9 = vpop.permute.xlu1 %900 }
 0x139   : > { %v946_v1 = vadd.f32 %v899_v59, %v866_v61  ;;  %v1039_v11 = vsel %vm975_vm9, %v943_v46, %v1007_v55  ;;  %v947_v8 = vadd.f32 %v899_v59, %v867_v63  ;;  %v1137_v12 = vsel %vm533_vm3, %v1071_v60, 0.0 }
 0x13a   : > { %v1040_v14 = vsel %vm976_vm10, %v944_v50, %v1008_v57  ;;  %v804_v13 = vpop.f32.mrf.mxu3  ;;  %v945_v3 = vadd.f32 %v897_v39, %v865_v7  ;;  %v1038_v42 = vsel %vm974_vm11, %v942_v53, %v1006_v62  ;;  %v1075_v15 = vmul.f32 %v2086_v27, %v1039_v11 }
 0x13b   : > { %v1010_v16 = vmul.f32 0.2, %v946_v1  ;;  %v1076_v6 = vmul.f32 %v2086_v27, %v1040_v14  ;;  %v1011_v18 = vmul.f32 0.2, %v947_v8  ;;  %v1074_v21 = vmul.f32 %v2086_v27, %v1038_v42 }
 0x13c   : > { %vm978_vm12 = vcmp.gt.f32.partialorder %v946_v1, 0.0  ;;  %v1009_v22 = vmul.f32 0.2, %v945_v3  ;;  %vm979_vm13 = vcmp.gt.f32.partialorder %v947_v8, 0.0  ;;  %v1149_v2 = vsel %vm533_vm3, %v1075_v15, 0.0 }
 0x13d   : > { %vm977_vm14 = vcmp.gt.f32.partialorder %v945_v3, 0.0  ;;  %v868_v26 = vadd.f32 %v2112_v20, %v2020_v43  ;;  %v1152_v29 = vsel %vm533_vm3, %v1076_v6, 0.0  ;;  %v1042_v30 = vsel %vm978_vm12, %v946_v1, %v1010_v16  ;;  %v905_v36 = vpop.permute.xlu0 %904 }
 0x13e   : > { %1123 = vadd.xlane.f32.xlu0 %v1122_v10  ;;  %1120 = vadd.xlane.f32.xlu2 %v1119_v58  ;;  %v869_v10 = vadd.f32 %v2125_v47, %v2028_v48  ;;  %v1146_v47 = vsel %vm533_vm3, %v1074_v21, 0.0  ;;  %v1043_v32 = vsel %vm979_vm13, %v947_v8, %v1011_v18  ;;  %v1041_v28 = vsel %vm977_vm14, %v945_v3, %v1009_v22 }
 0x13f   : > { %1126 = vadd.xlane.f32.xlu1 %v1125_v24  ;;  %v870_v24 = vadd.f32 %v2143_v17, %v2020_v43  ;;  %v948_v33 = vadd.f32 %v901_v9, %v868_v26  ;;  %v1078_v17 = vmul.f32 %v2086_v27, %v1042_v30  ;;  %v1079_v35 = vmul.f32 %v2086_v27, %v1043_v32 }
 0x140   : > { %v949_v58 = vadd.f32 %v901_v9, %v869_v10  ;;  %v1077_v37 = vmul.f32 %v2086_v27, %v1041_v28  ;;  %v872_v38 = vadd.f32 %v804_v13, %v2020_v43  ;;  %v871_v44 = vadd.f32 %v2159_v45, %v2028_v48 }
 0x141   : > { %v950_v31 = vadd.f32 %v903_v23, %v870_v24  ;;  %v1012_v39 = vmul.f32 0.2, %v948_v33  ;;  %vm980_vm1 = vcmp.gt.f32.partialorder %v948_v33, 0.0  ;;  %v1218_v9 = vlaneseq }
 0x142   : > { %v807_v34 = vpop.f32.mrf.mxu3  ;;  %v1013_v25 = vmul.f32 0.2, %v949_v58  ;;  %vm981_vm15 = vcmp.gt.f32.partialorder %v949_v58, 0.0  ;;  %v952_v46 = vadd.f32 %v905_v36, %v872_v38  ;;  %v951_v52 = vadd.f32 %v903_v23, %v871_v44 }
 0x143   : > { %v1014_v20 = vmul.f32 0.2, %v950_v31  ;;  %vm982_vm0 = vcmp.gt.f32.partialorder %v950_v31, 0.0  ;;  %v873_v40 = vadd.f32 %v807_v34, %v2028_v48  ;;  %v1044_v53 = vsel %vm980_vm1, %v948_v33, %v1012_v39 }
 0x144   : > { %v1045_v19 = vsel %vm981_vm15, %v949_v58, %v1013_v25  ;;  %v1016_v54 = vmul.f32 0.2, %v952_v46  ;;  %v1080_v48 = vmul.f32 %v2086_v27, %v1044_v53  ;;  %vm984_vm2 = vcmp.gt.f32.partialorder %v952_v46, 0.0 }
 0x145   : > { %v953_v50 = vadd.f32 %v905_v36, %v873_v40  ;;  %v1046_v43 = vsel %vm982_vm0, %v950_v31, %v1014_v20  ;;  %v1081_v5 = vmul.f32 %v2086_v27, %v1045_v19  ;;  %v1015_v45 = vmul.f32 0.2, %v951_v52 }
 0x146   : > { %1132 = vadd.xlane.f32.xlu0 %v1131_v41  ;;  %1129 = vadd.xlane.f32.xlu2 %v1128_v51  ;;  %v1158_v41 = vsel %vm533_vm3, %v1078_v17, 0.0  ;;  %v1155_v51 = vsel %vm533_vm3, %v1077_v37, 0.0  ;;  %v1082_v55 = vmul.f32 %v2086_v27, %v1046_v43  ;;  %vm983_vm5 = vcmp.gt.f32.partialorder %v951_v52, 0.0 }
 0x147   : > { %1135 = vadd.xlane.f32.xlu1 %v1134_v49  ;;  %v1161_v49 = vsel %vm533_vm3, %v1079_v35, 0.0  ;;  %v1017_v56 = vmul.f32 0.2, %v953_v50  ;;  %vm985_vm4 = vcmp.gt.f32.partialorder %v953_v50, 0.0  ;;  %v1167_v57 = vsel %vm533_vm3, %v1081_v5, 0.0 }
 0x148   : > { %v1170_v59 = vsel %vm533_vm3, %v1082_v55, 0.0  ;;  %v1048_v60 = vsel %vm984_vm2, %v952_v46, %v1016_v54  ;;  %v1164_v61 = vsel %vm533_vm3, %v1080_v48, 0.0  ;;  %v1047_v63 = vsel %vm983_vm5, %v951_v52, %v1015_v45  ;;  %v1182_v52 = vld [vmem:[%s2339_s2] sm:$0xff] }
 0x149   : > { %v1049_v62 = vsel %vm985_vm4, %v953_v50, %v1017_v56  ;;  %v1083_v1 = vmul.f32 %v2086_v27, %v1047_v63  ;;  %v2209_v18 = vand.u32 127, %v1218_v9  ;;  %vm1223_vm6 = vcmask 130112  }
 0x14a   : > { %v1085_v7 = vmul.f32 %v2086_v27, %v1049_v62  ;;  %vm1270_vm7 = vcmask 1041409   ;;  %vm1272_vm8 = vcmask 1042434   ;;  %vm1274_vm9 = vcmask 1043459  }
 0x14b   : > { %v1173_v8 = vsel %vm533_vm3, %v1083_v1, 0.0  ;;  %v2212_v22 = vadd.s32 4294967288, %v2209_v18  ;;  %vm1276_vm10 = vcmask 1044484   ;;  %vm1278_vm11 = vcmask 1045509  }
 0x14c   : > { %v1179_v11 = vsel %vm533_vm3, %v1085_v7, 0.0  ;;  %vm1280_vm12 = vcmask 1046534   ;;  %vm1282_vm13 = vcmask 1047559   ;;  %vm1184_vm14 = vcmp.gt.f32.partialorder %v1182_v52, 0.0 }
 0x14d   : > { %vm1295_vm15 = vcmask 130048  }
 0x14e   : > { %1141 = vadd.xlane.f32.xlu0 %v1140_v0  ;;  %1138 = vadd.xlane.f32.xlu2 %v1137_v12  ;;  %v1084_v0 = vmul.f32 %v2086_v27, %v1048_v60 }
 0x14f   : > { %1144 = vadd.xlane.f32.xlu1 %v1143_v4 }
 0x150   : > { %v1176_v4 = vsel %vm533_vm3, %v1084_v0, 0.0 }
 0x156   : > { %1150 = vadd.xlane.f32.xlu0 %v1149_v2  ;;  %1147 = vadd.xlane.f32.xlu2 %v1146_v47 }
 0x157   : > { %1153 = vadd.xlane.f32.xlu1 %v1152_v29 }
 0x15e   : > { %1159 = vadd.xlane.f32.xlu0 %v1158_v41  ;;  %1156 = vadd.xlane.f32.xlu2 %v1155_v51 }
 0x15f   : > { %1162 = vadd.xlane.f32.xlu1 %v1161_v49 }
 0x166   : > { %1168 = vadd.xlane.f32.xlu0 %v1167_v57  ;;  %1165 = vadd.xlane.f32.xlu2 %v1164_v61 }
 0x167   : > { %1171 = vadd.xlane.f32.xlu1 %v1170_v59 }
 0x16e   : > { %1177 = vadd.xlane.f32.xlu0 %v1176_v4  ;;  %1174 = vadd.xlane.f32.xlu2 %v1173_v8 }
 0x16f   : > { %1180 = vadd.xlane.f32.xlu1 %v1179_v11 }
 0x191   : > { %v1091_v12 = vpop.xlane.xlu2 %1090 }
 0x192   : > { %v1088_v14 = vpop.xlane.xlu1 %1087  ;;  %v1222_v26 = vperm.slane %v1091_v12, %v2212_v22 }
 0x193   : > { %v1220_v58 = vperm.slane %v1088_v14, %v2209_v18 }
 0x195   : > { %v1224_v35 = vsel %vm1223_vm6, %v1222_v26, %v1220_v58 }
 0x199   : > { %v1094_v13 = vpop.xlane.xlu0 %1093  ;;  %v1097_v42 = vpop.xlane.xlu2 %1096 }
 0x19a   : > { %v1100_v3 = vpop.xlane.xlu1 %1099  ;;  %v1226_v23 = vperm.slane %v1097_v42, %v2212_v22  ;;  %v1225_v24 = vperm.slane %v1094_v13, %v2209_v18 }
 0x19b   : > { %v1228_v29 = vperm.slane %v1100_v3, %v2209_v18 }
 0x19c   : > { %v1227_v31 = vsel %vm1223_vm6, %v1226_v23, %v1225_v24 }
 0x19d   : > { %v1271_v36 = vsel %vm1270_vm7, %v1227_v31, %v1224_v35 }
 0x1a1   : > { %v1106_v15 = vpop.xlane.xlu0 %1105  ;;  %v1103_v6 = vpop.xlane.xlu2 %1102 }
 0x1a2   : > { %v1109_v16 = vpop.xlane.xlu1 %1108  ;;  %v1229_v2 = vperm.slane %v1103_v6, %v2212_v22  ;;  %v1231_v32 = vperm.slane %v1106_v15, %v2209_v18 }
 0x1a3   : > { %v1232_v47 = vperm.slane %v1109_v16, %v2212_v22 }
 0x1a4   : > { %v1230_v28 = vsel %vm1223_vm6, %v1229_v2, %v1228_v29 }
 0x1a5   : > { %v1273_v37 = vsel %vm1272_vm8, %v1230_v28, %v1271_v36  ;;  %v1233_v38 = vsel %vm1223_vm6, %v1232_v47, %v1231_v32 }
 0x1a6   : > { %v1275_v49 = vsel %vm1274_vm9, %v1233_v38, %v1273_v37 }
 0x1a9   : > { %v1115_v27 = vpop.xlane.xlu0 %1114  ;;  %v1112_v10 = vpop.xlane.xlu2 %1111 }
 0x1aa   : > { %v1118_v21 = vpop.xlane.xlu1 %1117  ;;  %v1234_v17 = vperm.slane %v1112_v10, %v2209_v18  ;;  %v1235_v34 = vperm.slane %v1115_v27, %v2212_v22 }
 0x1ab   : > { %v1237_v39 = vperm.slane %v1118_v21, %v2209_v18 }
 0x1ac   : > { %v1236_v40 = vsel %vm1223_vm6, %v1235_v34, %v1234_v17 }
 0x1ad   : > { %v1277_v50 = vsel %vm1276_vm10, %v1236_v40, %v1275_v49 }
 0x1b1   : > { %v1124_v30 = vpop.xlane.xlu0 %1123  ;;  %v1121_v25 = vpop.xlane.xlu2 %1120 }
 0x1b2   : > { %v1127_v33 = vpop.xlane.xlu1 %1126  ;;  %v1238_v20 = vperm.slane %v1121_v25, %v2212_v22  ;;  %v1240_v44 = vperm.slane %v1124_v30, %v2209_v18 }
 0x1b3   : > { %v1241_v41 = vperm.slane %v1127_v33, %v2212_v22 }
 0x1b4   : > { %v1239_v46 = vsel %vm1223_vm6, %v1238_v20, %v1237_v39  ;;  %v1183_v20 = vld [vmem:[%s2339_s2 + $0x8] sm:$0xff] }
 0x1b5   : > { %v1242_v53 = vsel %vm1223_vm6, %v1241_v41, %v1240_v44  ;;  %v1279_v54 = vsel %vm1278_vm11, %v1239_v46, %v1277_v50  ;;  %vm1185_vm0 = vcmp.gt.f32.partialorder %v1183_v20, 0.0 }
 0x1b6   : > { %v1281_v48 = vsel %vm1280_vm12, %v1242_v53, %v1279_v54 }
 0x1b9   : > { %v1133_v19 = vpop.xlane.xlu0 %1132  ;;  %v1130_v5 = vpop.xlane.xlu2 %1129 }
 0x1ba   : > { %v1136_v51 = vpop.xlane.xlu1 %1135  ;;  %v1244_v43 = vperm.slane %v1133_v19, %v2212_v22  ;;  %v1243_v55 = vperm.slane %v1130_v5, %v2209_v18 }
 0x1bb   : > { %v1246_v16 = vperm.slane %v1136_v51, %v2209_v18 }
 0x1bc   : > { %v1245_v56 = vsel %vm1223_vm6, %v1244_v43, %v1243_v55 }
 0x1bd   : > { %v1283_v45 = vsel %vm1282_vm13, %v1245_v56, %v1281_v48 }
 0x1be   : > { %v1293_v57 = vsel %vm1184_vm14, %v1283_v45, -1e+30 }
 0x1bf   : > { %v1296_v59 = vsel %vm1295_vm15, %v1293_v57, -inf }
 0x1c0   : > { %1297 = vmax.xlane.f32.xlu2 %v1296_v59 }
 0x1c1   : > { %v1142_v60 = vpop.xlane.xlu0 %1141  ;;  %v1139_v62 = vpop.xlane.xlu2 %1138 }
 0x1c2   : > { %v1145_v61 = vpop.xlane.xlu1 %1144  ;;  %v1247_v8 = vperm.slane %v1139_v62, %v2212_v22  ;;  %v1249_v14 = vperm.slane %v1142_v60, %v2209_v18 }
 0x1c3   : > { %v1250_v12 = vperm.slane %v1145_v61, %v2212_v22 }
 0x1c4   : > { %v1248_v27 = vsel %vm1223_vm6, %v1247_v8, %v1246_v16 }
 0x1c5   : > { %v1251_v21 = vsel %vm1223_vm6, %v1250_v12, %v1249_v14 }
 0x1c6   : > { %v1284_v30 = vsel %vm1270_vm7, %v1251_v21, %v1248_v27 }
 0x1c9   : > { %v1151_v63 = vpop.xlane.xlu0 %1150  ;;  %v1148_v7 = vpop.xlane.xlu2 %1147 }
 0x1ca   : > { %v1154_v0 = vpop.xlane.xlu1 %1153  ;;  %v1252_v3 = vperm.slane %v1148_v7, %v2209_v18  ;;  %v1253_v42 = vperm.slane %v1151_v63, %v2212_v22 }
 0x1cb   : > { %v1255_v10 = vperm.slane %v1154_v0, %v2209_v18 }
 0x1cc   : > { %v1254_v23 = vsel %vm1223_vm6, %v1253_v42, %v1252_v3 }
 0x1cd   : > { %v1285_v31 = vsel %vm1272_vm8, %v1254_v23, %v1284_v30 }
 0x1d1   : > { %v1160_v1 = vpop.xlane.xlu0 %1159  ;;  %v1157_v11 = vpop.xlane.xlu2 %1156 }
 0x1d2   : > { %v1163_v4 = vpop.xlane.xlu1 %1162  ;;  %v1256_v6 = vperm.slane %v1157_v11, %v2212_v22  ;;  %v1258_v2 = vperm.slane %v1160_v1, %v2209_v18  ;;  %v1698_v1 = vld [vmem:[%s507_s12] ss:$0 sm:$0xff] }
 0x1d3   : > { %v1259_v24 = vperm.slane %v1163_v4, %v2212_v22 }
 0x1d4   : > { %v1257_v26 = vsel %vm1223_vm6, %v1256_v6, %v1255_v10 }
 0x1d5   : > { %v1286_v32 = vsel %vm1274_vm9, %v1257_v26, %v1285_v31  ;;  %v1260_v33 = vsel %vm1223_vm6, %v1259_v24, %v1258_v2 }
 0x1d6   : > { %v1287_v38 = vsel %vm1276_vm10, %v1260_v33, %v1286_v32 }
 0x1d9   : > { %v1169_v13 = vpop.xlane.xlu0 %1168  ;;  %v1166_v9 = vpop.xlane.xlu2 %1165 }
 0x1da   : > { %v1172_v15 = vpop.xlane.xlu1 %1171  ;;  %v1261_v58 = vperm.slane %v1166_v9, %v2209_v18  ;;  %v1262_v29 = vperm.slane %v1169_v13, %v2212_v22 }
 0x1db   : > { %v1264_v36 = vperm.slane %v1172_v15, %v2209_v18 }
 0x1dc   : > { %v1263_v34 = vsel %vm1223_vm6, %v1262_v29, %v1261_v58 }
 0x1dd   : > { %v1288_v41 = vsel %vm1278_vm11, %v1263_v34, %v1287_v38 }
 0x1e1   : > { %v1178_v47 = vpop.xlane.xlu0 %1177  ;;  %v1175_v25 = vpop.xlane.xlu2 %1174 }
 0x1e2   : > { %v1181_v28 = vpop.xlane.xlu1 %1180  ;;  %v1267_v17 = vperm.slane %v1178_v47, %v2209_v18  ;;  %v1265_v37 = vperm.slane %v1175_v25, %v2212_v22 }
 0x1e3   : > { %v1268_v35 = vperm.slane %v1181_v28, %v2212_v22 }
 0x1e4   : > { %v1266_v40 = vsel %vm1223_vm6, %v1265_v37, %v1264_v36 }
 0x1e5   : > { %v1269_v39 = vsel %vm1223_vm6, %v1268_v35, %v1267_v17  ;;  %v1289_v44 = vsel %vm1280_vm12, %v1266_v40, %v1288_v41 }
 0x1e6   : > { %v1290_v46 = vsel %vm1282_vm13, %v1269_v39, %v1289_v44 }
 0x1e7   : > { %v1294_v49 = vsel %vm1185_vm0, %v1290_v46, -1e+30 }
 0x1e8   : > { %v1299_v19 = vsel %vm1295_vm15, %v1294_v49, -inf }
 0x1e9   : > { %1300 = vmax.xlane.f32.xlu0 %v1299_v19 }
 0x233   : > { %v1298_v18 = vpop.xlane.xlu2 %1297 }
 0x234   : > { %v1302_v50 = vsub.f32 %v1293_v57, %v1298_v18 }
 0x236   : > { %v1304_v22 = vmul.f32 1.442695, %v1302_v50 }
 0x238   : > { %1701 = vpow2.f32 %v1304_v22 }
 0x23e   : > { %v1702_v51 = vpop.eup %1701 }
 0x23f   : > { %1667 = vmatmul.msk.f32.vlgmr.msrb.gmra.mxu2 %vm1295_vm15, %v1702_v51  ;;  %v1308_v43 = vsel %vm1295_vm15, %v1702_v51, 0.0 }
 0x240   : > { %1309 = vadd.xlane.f32.xlu1 %v1308_v43 }
 0x25c   : > { %v1301_v52 = vpop.xlane.xlu0 %1300 }
 0x25d   : > { %v1303_v53 = vsub.f32 %v1294_v49, %v1301_v52 }
 0x25f   : > { %v1306_v5 = vmul.f32 1.442695, %v1303_v53 }
 0x261   : > { %1703 = vpow2.f32 %v1306_v5 }
 0x267   : > { %v1704_v54 = vpop.eup %1703 }
 0x268   : > { %1668 = vmatmul.msk.f32.gmra.mxu2 %vm1295_vm15, %v1704_v54  ;;  %v1311_v55 = vsel %vm1295_vm15, %v1704_v54, 0.0 }
 0x269   : > { %1312 = vadd.xlane.f32.xlu2 %v1311_v55 }
 0x2b3   : > { %v1310_v56 = vpop.xlane.xlu1 %1309 }
 0x2b4   : > { %v1314_v48 = vadd.f32 1e-16, %v1310_v56 }
 0x2b6   : > { %1705 = vrcp.f32 %v1314_v48  ;;  %v1356_v60 = vand.u32 2147483648, %v1314_v48  ;;  %v1354_v62 = vand.u32 2147483647, %v1314_v48  ;;  %vm1350_vm2 = vweird.f32 %v1314_v48 }
 0x2b8   : > { %v1357_v0 = vor.u32 1.1754944e-38, %v1356_v60  ;;  %vm1355_vm5 = vcmp.eq.f32.partialorder %v1354_v62, 8.507059e+37 }
 0x2bc   : > { %v1706_v45 = vpop.eup %1705 }
 0x2bd   : > { %v1346_v57 = vmul.f32 %v1706_v45, %v1314_v48  ;;  %vm1351_vm1 = vweird.f32 %v1706_v45 }
 0x2be   : > { %vm1352_vm4 = vmor %vm1350_vm2, %vm1351_vm1 }
 0x2bf   : > { %v1347_v59 = vsub.f32 1.0, %v1346_v57 }
 0x2c1   : > { %v1348_v61 = vmul.f32 %v1706_v45, %v1347_v59 }
 0x2c2   : > { %v1339_v4 = vpop.f32.mrf.mxu2 }
 0x2c3   : > { %v1349_v63 = vadd.f32 %v1706_v45, %v1348_v61 }
 0x2c5   : > { %v1353_v7 = vsel %vm1352_vm4, %v1706_v45, %v1349_v63 }
 0x2c6   : > { %v1358_v11 = vsel %vm1355_vm5, %v1357_v0, %v1353_v7 }
 0x2c7   : > { %v1373_v8 = vmul.f32 %v1358_v11, %v1339_v4 }
 0x2c9   : > { %v1379_v12 = vadd.f32 %v1698_v1, %v1373_v8  ;;  %v1699_v8 = vld [vmem:[%s510_s14] ss:$0 sm:$0xff] }
 0x2cb   : > { %v1381_v14 = vsel %vm533_vm3, %v1379_v12, 0.0 }
 0x2cc   : > { %1382 = vadd.xlane.f32.xlu0 %v1381_v14 }
 0x2dc   : > { %v1313_v13 = vpop.xlane.xlu2 %1312 }
 0x2dd   : > { %v1315_v3 = vadd.f32 1e-16, %v1313_v13  ;;  %v1700_v13 = vld [vmem:[%s513_s16] ss:$0 sm:$0xff] }
 0x2df   : > { %1707 = vrcp.f32 %v1315_v3  ;;  %v1370_v6 = vand.u32 2147483648, %v1315_v3  ;;  %v1368_v27 = vand.u32 2147483647, %v1315_v3  ;;  %vm1364_vm7 = vweird.f32 %v1315_v3 }
 0x2e1   : > { %v1371_v10 = vor.u32 1.1754944e-38, %v1370_v6  ;;  %vm1369_vm9 = vcmp.eq.f32.partialorder %v1368_v27, 8.507059e+37 }
 0x2e5   : > { %v1708_v42 = vpop.eup %1707 }
 0x2e6   : > { %v1360_v15 = vmul.f32 %v1708_v42, %v1315_v3  ;;  %vm1365_vm6 = vweird.f32 %v1708_v42 }
 0x2e7   : > { %vm1366_vm8 = vmor %vm1364_vm7, %vm1365_vm6 }
 0x2e8   : > { %v1361_v16 = vsub.f32 1.0, %v1360_v15 }
 0x2ea   : > { %v1362_v9 = vmul.f32 %v1708_v42, %v1361_v16 }
 0x2eb   : > { %v1342_v24 = vpop.f32.mrf.mxu2 }
 0x2ec   : > { %v1363_v21 = vadd.f32 %v1708_v42, %v1362_v9 }
 0x2ee   : > { %v1367_v23 = vsel %vm1366_vm8, %v1708_v42, %v1363_v21 }
 0x2ef   : > { %v1372_v2 = vsel %vm1369_vm9, %v1371_v10, %v1367_v23 }
 0x2f0   : > { %v1374_v26 = vmul.f32 %v1372_v2, %v1342_v24 }
 0x2f2   : > { %v1380_v58 = vadd.f32 %v1698_v1, %v1374_v26 }
 0x2f4   : > { %v1384_v29 = vsel %vm533_vm3, %v1380_v58, 0.0 }
 0x2f5   : > { %1385 = vadd.xlane.f32.xlu1 %v1384_v29 }
 0x33f   : > { %v1383_v30 = vpop.xlane.xlu0 %1382 }
 0x368   : > { %v1386_v31 = vpop.xlane.xlu1 %1385 }
 0x369   : > { %v1387_v47 = vadd.f32 %v1386_v31, %v1383_v30 }
 0x36b   : > { %v1388_v32 = vrot.slane %v1387_v47, 4 }
 0x36d   : > { %v1389_v33 = vadd.f32 %v1388_v32, %v1387_v47 }
 0x36f   : > { %v1390_v28 = vrot.slane %v1389_v33, 2 }
 0x371   : > { %v1391_v17 = vadd.f32 %v1390_v28, %v1389_v33 }
 0x373   : > { %v1392_v34 = vrot.slane %v1391_v17, 1 }
 0x375   : > { %v1393_v25 = vadd.f32 %v1392_v34, %v1391_v17 }
 0x377   : > { %v1394_v35 = vmul.f32 0.001953125, %v1393_v25 }
 0x379   : > { %v1396_v20 = vsub.f32 %v1380_v58, %v1394_v35  ;;  %v1395_v36 = vsub.f32 %v1379_v12, %v1394_v35 }
 0x37b   : > { %v1398_v37 = vmul.f32 %v1396_v20, %v1396_v20  ;;  %v1397_v38 = vmul.f32 %v1395_v36, %v1395_v36 }
 0x37d   : > { %v1402_v39 = vsel %vm533_vm3, %v1398_v37, 0.0  ;;  %v1399_v40 = vsel %vm533_vm3, %v1397_v38, 0.0 }
 0x37e   : > { %1403 = vadd.xlane.f32.xlu0 %v1402_v39  ;;  %1400 = vadd.xlane.f32.xlu2 %v1399_v40 }
 0x3f1   : > { %v1404_v41 = vpop.xlane.xlu0 %1403  ;;  %v1401_v44 = vpop.xlane.xlu2 %1400 }
 0x3f2   : > { %v1405_v46 = vadd.f32 %v1404_v41, %v1401_v44 }
 0x3f4   : > { %v1406_v49 = vrot.slane %v1405_v46, 4 }
 0x3f6   : > { %v1407_v19 = vadd.f32 %v1406_v49, %v1405_v46 }
 0x3f8   : > { %v1408_v18 = vrot.slane %v1407_v19, 2 }
 0x3fa   : > { %v1409_v50 = vadd.f32 %v1408_v18, %v1407_v19 }
 0x3fc   : > { %v1410_v22 = vrot.slane %v1409_v50, 1 }
 0x3fe   : > { %v1411_v51 = vadd.f32 %v1410_v22, %v1409_v50 }
 0x400   : > { %v1412_v43 = vmul.f32 0.001953125, %v1411_v51 }
 0x402   : > { %1709 = vrsqrt.f32 %v1412_v43  ;;  %vm1420_vm10 = vcmp.eq.f32.partialorder %v1412_v43, inf  ;;  %v1423_v45 = vand.u32 2147483648, %v1412_v43  ;;  %vm1422_vm11 = vcmp.eq.f32.partialorder %v1412_v43, 0.0 }
 0x408   : > { %v1710_v52 = vpop.eup %1709 }
 0x409   : > { %v1414_v53 = vmul.f32 %v1710_v52, %v1412_v43 }
 0x40b   : > { %v1415_v5 = vmul.f32 %v1710_v52, %v1414_v53 }
 0x40d   : > { %v1416_v54 = vmul.f32 0.5, %v1415_v5 }
 0x40f   : > { %v1417_v55 = vsub.f32 1.5, %v1416_v54 }
 0x411   : > { %v1418_v56 = vmul.f32 %v1710_v52, %v1417_v55 }
 0x413   : > { %v1419_v48 = vmul.f32 %v1418_v56, %v1412_v43 }
 0x415   : > { %v1421_v57 = vsel %vm1420_vm10, %v1412_v43, %v1419_v48 }
 0x416   : > { %v1424_v59 = vsel %vm1422_vm11, %v1423_v45, %v1421_v57 }
 0x417   : > { %v1425_v60 = vadd.f32 1e-05, %v1424_v59 }
 0x419   : > { %1711 = vrcp.f32 %v1425_v60  ;;  %v1437_v0 = vand.u32 2147483648, %v1425_v60  ;;  %v1435_v1 = vand.u32 2147483647, %v1425_v60  ;;  %vm1431_vm13 = vweird.f32 %v1425_v60 }
 0x41b   : > { %v1438_v11 = vor.u32 1.1754944e-38, %v1437_v0  ;;  %vm1436_vm0 = vcmp.eq.f32.partialorder %v1435_v1, 8.507059e+37 }
 0x41f   : > { %v1712_v61 = vpop.eup %1711 }
 0x420   : > { %v1427_v62 = vmul.f32 %v1712_v61, %v1425_v60  ;;  %vm1432_vm12 = vweird.f32 %v1712_v61 }
 0x421   : > { %vm1433_vm14 = vmor %vm1431_vm13, %vm1432_vm12 }
 0x422   : > { %v1428_v63 = vsub.f32 1.0, %v1427_v62 }
 0x424   : > { %v1429_v7 = vmul.f32 %v1712_v61, %v1428_v63 }
 0x426   : > { %v1430_v4 = vadd.f32 %v1712_v61, %v1429_v7 }
 0x428   : > { %v1434_v12 = vsel %vm1433_vm14, %v1712_v61, %v1430_v4 }
 0x429   : > { %v1439_v14 = vsel %vm1436_vm0, %v1438_v11, %v1434_v12 }
 0x42a   : > { %v1440_v3 = vmul.f32 %v1439_v14, %v1395_v36  ;;  %v1441_v42 = vmul.f32 %v1439_v14, %v1396_v20 }
 0x42c   : > { %v1446_v15 = vmul.f32 %v1699_v8, %v1440_v3  ;;  %v1447_v16 = vmul.f32 %v1699_v8, %v1441_v42 }
 0x42e   : > { %v1452_v6 = vadd.f32 %v1700_v13, %v1446_v15  ;;  %v1453_v9 = vadd.f32 %v1700_v13, %v1447_v16 }
 0x42f   : > { %1461 = sbr.rel (%p1669_p5) target bundleno = 1334 (0x536), region = 80 }
 0x430   : > { %v1454_v27 = vmax.f32 %v1452_v6, 0.0  ;;  %v1455_v21 = vmax.f32 %v1453_v9, 0.0 }
 0x432   : > { %1456 = vst.msk [vmem:[#allocation2] sm:$0xff] %vm533_vm3, %v1454_v27 }
 0x433   : > { %1457 = vst.msk [vmem:[#allocation2 + $0x8] sm:$0xff] %vm533_vm3, %v1455_v21 }
 0x434   : > { %1480 = vmatpush.msra.mxu0 %v1455_v21  ;;  %v1462_v10 = vld [vmem:[%s2340_s3] sm:$0x3]  ;;  %v1489_v23 = vld [vmem:[%s2348_s11 + $0x18] sm:$0xff]  ;;  %v1488_v24 = vld [vmem:[%s2348_s11 + $0x10] sm:$0xff]  ;;  %vm1517_vm1 = vcmask 254976  }
 0x435   : > { %1509 = vmatpush.msra.mxu1 %v1489_v23  ;;  %v1487_v2 = vld [vmem:[%s2348_s11 + $0x8] sm:$0xff]  ;;  %v1486_v26 = vld [vmem:[%s2348_s11] sm:$0xff] }
 0x436   : > { %1481 = vmatpush.msra.mxu0 %v1454_v27  ;;  %v1713_v29 = vld [vmem:[%s2356_s18] ss:$0 sm:$0xff] }
 0x437   : > { %1670 = vmatmul.msk.f32.vlgmr.msra.gmra.mxu0 %vm1295_vm15, %v1462_v10  ;;  %1510 = vmatpush.msra.mxu1 %v1488_v24 }
 0x439   : > { %1511 = vmatpush.msra.mxu1 %v1487_v2 }
 0x43b   : > { %1512 = vmatpush.msra.mxu1 %v1486_v26 }
 0x4b4   : > { %v1483_v58 = vpop.f32.mrf.mxu0 }
 0x4b5   : > { %1671 = vmatmul.msk.f32.vlgmr.msra.gmra.mxu1 %vm533_vm3, %v1483_v58 }
 0x532   : > { %v1514_v30 = vpop.f32.mrf.mxu1 }
 0x533   : > { %v1515_v31 = vadd.f32 %v1713_v29, %v1514_v30 }
 0x535   : > { %1518 = vst.msk [vmem:[#allocation3] sm:$0x3] %vm1517_vm1, %v1515_v31 }
 0x536 PF: > { %p1684_p6 = scmp.eq.s32.totalorder %s1832_s26, 3  ;;  %s1755_s19 = smov [#allocation3]  }
 0x537   : > { %s1525_s12 = sshll.u32 %s1755_s19, 4  ;;  %s2357_s17 = sld [smem:[#allocation8_spill]]  ;;  %s1526_s12 = int_to_ptr.vmem [resolvable:$true] %s1525_s12 }
 0x53d   : > { %s1527_s14 = sshll.u32 %s2357_s17, 4  ;;  %s1528_s14 = int_to_ptr.hbm [resolvable:$true] %s1527_s14 }
 0x53e   : > { %1681 = dma.vmem_to_hbm [thread:$0]  (%p1684_p6), %s1526_s12, 32, %s1528_s14, [#allocation4]  }
 0x53f   : > { %1747 = dma.done.wait (%p1684_p6), [#allocation4], 32  }
 0x540   : > { %1749 = vsyncadd (%p1684_p6), [#allocation4], 4294967264 }
 0x541 PF: > { %s2358_s13 = sld [smem:[#allocation6_spill]] }
 0x547   : > { %s24_s25 = sadd.s32 1, %s2358_s13  }
 0x548   : > { %p21_p7 = scmp.ge.s32.totalorder %s24_s25, 6  }
 0x54a   :  { %23 = sbr.rel (!%p21_p7) target bundleno = 4 (0x4), region = 125 }
 0x54f   :  { %1541 = vsyncpa [#allocation4], 1 }
 0x550   :  { %1543 = vsyncpa [#allocation4 + $0x1], 1 }

</bundles_post_ra>
